<compile_context>
chip_gen: v6e
topology: v6e:2x2x1
jax: 0.10.0
libtpu: 0.0.40
codegen_flags: <defaults>
</compile_context>

<pallas_src>
import math
import functools

import jax
import jax.numpy as jnp
from jax.experimental import pallas as pl
from jax.experimental.pallas import tpu as pltpu

EMB = 128                    # emb_size
HEADS = 1                    # num_heads
MLP_RATIO = 4.0
HID = int(EMB * MLP_RATIO)   # 512
LN_EPS = 1e-5


# --------------------------------------------------------------------------------------
# Hardware introspection (all guarded; conservative fallbacks keep the kernel correct).
# --------------------------------------------------------------------------------------
def _vmem_capacity_bytes():
    try:
        cap = int(getattr(pltpu.get_tpu_info(), "vmem_capacity_bytes", 0))
        if cap > 0:
            return cap
    except Exception:
        pass
    kind = ""
    try:
        kind = str(getattr(jax.devices()[0], "device_kind", "")).lower()
    except Exception:
        pass
    if any(t in kind for t in ("v5 lite", "v5e", "v5litepod", "v6", "trillium")):
        return 128 * 1024 * 1024
    return 64 * 1024 * 1024          # conservative: v7x per-TensorCore VMEM


def _num_tensorcores():
    try:
        dev = jax.devices()[0]
    except Exception:
        return 1
    for attr in ("num_cores", "core_count"):
        n = getattr(dev, attr, None)
        if isinstance(n, int) and n > 0:
            return n
    kind = str(getattr(dev, "device_kind", "")).lower()
    if any(t in kind for t in ("v5 lite", "v5e", "v5litepod", "v6", "trillium")):
        return 1
    if any(t in kind for t in ("v4", "v5p", "v5", "v7", "7x")):
        return 2                      # megacore / dual-TensorCore parts
    return 1


@functools.lru_cache(maxsize=1)
def _single_buffer_supported():
    """Probe whether pipeline_mode=pl.Buffered(1) (single-buffered replicated weights) lowers."""
    try:
        def k(a_ref, w_ref, o_ref):
            o_ref[...] = a_ref[...] + w_ref[...]

        fn = pl.pallas_call(
            k,
            out_shape=jax.ShapeDtypeStruct((16, 128), jnp.float32),
            grid=(2,),
            in_specs=[
                pl.BlockSpec((8, 128), lambda i: (i, 0)),
                pl.BlockSpec((8, 128), lambda i: (0, 0), pipeline_mode=pl.Buffered(1)),
            ],
            out_specs=pl.BlockSpec((8, 128), lambda i: (i, 0)),
        )
        jax.jit(fn).lower(jnp.zeros((16, 128), jnp.float32),
                          jnp.zeros((8, 128), jnp.float32)).compile()
        return True
    except Exception:
        return False


_VMEM_CAP = _vmem_capacity_bytes()
_VMEM_LIMIT = int(_VMEM_CAP * 0.75)      # scoped limit handed to the compiler
_VMEM_BUDGET = int(_VMEM_CAP * 0.62)     # budget used for tile selection (headroom for scratch)
_NUM_CORES = _num_tensorcores()
_SINGLE_BUFFER_WEIGHTS = _single_buffer_supported()


# --------------------------------------------------------------------------------------
# Kernel
# --------------------------------------------------------------------------------------
def _layernorm(v, g, b):
    mu = jnp.mean(v, axis=-1, keepdims=True)
    var = jnp.mean((v - mu) ** 2, axis=-1, keepdims=True)
    return (v - mu) * jax.lax.rsqrt(var + LN_EPS) * g + b


def _gelu_exact(x):
    # nn.GELU() default is the exact erf form.
    return 0.5 * x * (1.0 + jax.lax.erf(x * (1.0 / math.sqrt(2.0))))


def encoder_kernel(x_ref,
                   ln1g_ref, ln1b_ref,
                   wqkv_ref, bqkv_ref,
                   wo_ref, bo_ref,
                   ln2g_ref, ln2b_ref,
                   w1_ref, b1_ref, w2_ref, b2_ref,
                   o_ref):
    bt, S, E = x_ref.shape
    Tq = o_ref.shape[1]
    bf16 = jnp.bfloat16

    ln1g = ln1g_ref[...]
    ln1b = ln1b_ref[...]

    # ---- K / V from the full sequence of this batch tile ---------------------
    x_full = x_ref[...].astype(jnp.float32).reshape(bt * S, E)
    h_kv_b = _layernorm(x_full, ln1g, ln1b).astype(bf16)
    kv = (jnp.dot(h_kv_b, wqkv_ref[:, E:3 * E],
                  preferred_element_type=jnp.float32) + bqkv_ref[:, E:3 * E])
    kv_b = kv.reshape(bt, S, 2 * E).astype(bf16)     # single bf16 copy, slice K/V from it
    k_b = kv_b[:, :, :E]
    v_b = kv_b[:, :, E:]

    # ---- Q for this query tile ------------------------------------------------
    qi = pl.program_id(1)
    q0 = qi * Tq
    if Tq % 8 == 0:
        q0 = pl.multiple_of(q0, 8)

    if Tq == S:                                      # common path: no q-chunking
        xq = x_full
        h_q_b = h_kv_b
    else:                                            # long-S path: ref-sliced query tile
        xq = x_ref[:, pl.ds(q0, Tq), :].astype(jnp.float32).reshape(bt * Tq, E)
        h_q_b = _layernorm(xq, ln1g, ln1b).astype(bf16)

    scale = 1.0 / math.sqrt(E // HEADS)
    q = (jnp.dot(h_q_b, wqkv_ref[:, :E],
                 preferred_element_type=jnp.float32) + bqkv_ref[:, :E]) * scale
    q_b = q.reshape(bt, Tq, E).astype(bf16)

    # ---- attention -------------------------------------------------------------
    s = jnp.einsum('bqd,bkd->bqk', q_b, k_b,
                   preferred_element_type=jnp.float32)          # (bt, Tq, S)
    s = s - jnp.max(s, axis=-1, keepdims=True)
    p = jnp.exp(s)
    # approx reciprocal runs on the EUP (free slot); ~1e-3 relative normalization error.
    p_b = (p * pl.reciprocal(jnp.sum(p, axis=-1, keepdims=True),
                             approx=True)).astype(bf16)         # single bf16 copy

    a = jnp.einsum('bqk,bkd->bqd', p_b, v_b,
                   preferred_element_type=jnp.float32)          # (bt, Tq, E)
    attn = jnp.dot(a.reshape(bt * Tq, E).astype(bf16), wo_ref[...],
                   preferred_element_type=jnp.float32) + bo_ref[...]

    x1 = xq + attn                                              # residual 1 (f32)

    # ---- MLP --------------------------------------------------------------------
    h2_b = _layernorm(x1, ln2g_ref[...], ln2b_ref[...]).astype(bf16)
    m = jnp.dot(h2_b, w1_ref[...], preferred_element_type=jnp.float32) + b1_ref[...]
    m = _gelu_exact(m)
    m = jnp.dot(m.astype(bf16), w2_ref[...],
                preferred_element_type=jnp.float32) + b2_ref[...]

    o_ref[...] = (x1 + m).reshape(bt, Tq, E).astype(o_ref.dtype)  # residual 2


# --------------------------------------------------------------------------------------
# Tile selection
# --------------------------------------------------------------------------------------
def _vmem_bytes(bt, S, Tq, E, hid, single_buf=_SINGLE_BUFFER_WEIGHTS):
    """Per-grid-step VMEM footprint including in-kernel intermediates and bf16 copies."""
    f32, b16 = 4, 2
    rkv, rq = bt * S, bt * Tq
    x_blk = 2 * bt * S * E * f32                    # input block, double-buffered
    o_blk = 2 * bt * Tq * E * f32                   # output block, double-buffered
    ln_kv = rkv * E * (f32 + b16)                   # LN1(x) + bf16 copy
    kv = rkv * 2 * E * (f32 + b16)                  # K|V projection + bf16 copy
    q_path = rq * E * (2 * f32 + 2 * b16)           # xq, LN, q, bf16 copies
    scores = bt * Tq * S * (2 * f32 + b16)          # s, exp(s), bf16 probs
    attn = rq * E * (2 * f32 + b16)                 # a, out-proj, bf16 copy
    mlp_in = rq * E * (2 * f32 + b16)               # residual + LN2 (+bf16)
    mlp = rq * hid * (2 * f32 + b16)                # m, gelu(m), bf16 copy
    mlp_out = rq * E * f32
    nbuf = 1 if single_buf else 2
    wts = (E * 3 * E + E * E + E * hid + hid * E) * b16 * nbuf
    bias = (3 * E + 2 * E + hid + E) * f32 * nbuf
    return (x_blk + o_blk + ln_kv + kv + q_path + scores + attn
            + mlp_in + mlp + mlp_out + wts + bias)


def _q_tile_candidates(S):
    """Descending query-tile sizes: divisors of S that are multiples of 8 (block legality)."""
    if S % 8 != 0:
        return [S]
    return [t for t in range(S - 8, 7, -8) if S % t == 0] or [S]


def _pick_tiles(B, S, E, hid, budget, target_rows=2048, multi_core=False):
    Tq = S
    bt = max(1, min(B, max(1, target_rows // S)))
    while bt > 1 and _vmem_bytes(bt, S, Tq, E, hid) > budget:
        bt -= 1

    # Large S: even bt=1 does not fit (the (S,S) score tile dominates) -> chunk queries.
    if _vmem_bytes(bt, S, Tq, E, hid) > budget:
        bt = 1
        cands = _q_tile_candidates(S)
        Tq = cands[-1]
        for cand in cands:
            if _vmem_bytes(1, S, cand, E, hid) <= budget:
                Tq = cand
                break
        # TODO(synk): if even the smallest q-tile overflows, K/V no longer fit; a kv grid
        # axis with online softmax (true flash) is required.

    # Avoid the host-side zero pad when a divisor of B is nearly as good.
    if B % bt != 0:
        div = max(d for d in range(1, bt + 1) if B % d == 0)
        if pl.cdiv(B, div) <= 2 * pl.cdiv(B, bt):
            bt = div

    # Only pay for the >=2-step split on parts with >=2 TensorCores (megacore / v7x).
    if multi_core and B > 1 and pl.cdiv(B, bt) * (S // Tq) < 2:
        half = pl.cdiv(B, 2)
        if half * Tq >= 128:
            bt = half
    return bt, Tq


# --------------------------------------------------------------------------------------
# Wrapper
# --------------------------------------------------------------------------------------
@functools.partial(jax.jit, static_argnames=("force_tiles",))
def transformer_encoder(x, params, force_tiles=None):
    (ln1_g, ln1_b, wqkv, bqkv, wo, bo, ln2_g, ln2_b, w1, b1, w2, b2) = params
    B, S, E = x.shape
    assert E == EMB

    if force_tiles is not None:
        bt, Tq = force_tiles
    else:
        bt, Tq = _pick_tiles(B, S, E, HID, budget=_VMEM_BUDGET,
                             target_rows=2048, multi_core=_NUM_CORES >= 2)
    nb = pl.cdiv(B, bt)
    nq = max(1, S // Tq)
    Bp = nb * bt
    # NOTE: input_output_aliases would only help if the caller donates x; without donation
    # XLA inserts a copy anyway, so we only avoid padding via the divisor-bt choice above.
    if Bp != B:
        x_in = jnp.concatenate([x, jnp.zeros((Bp - B, S, E), x.dtype)], axis=0)
    else:
        x_in = x

    # bf16 weights: halves weight DMA/VMEM and feeds the MXU natively.
    bf16 = jnp.bfloat16
    kparams = (ln1_g, ln1_b,
               wqkv.astype(bf16), bqkv,
               wo.astype(bf16), bo,
               ln2_g, ln2_b,
               w1.astype(bf16), b1,
               w2.astype(bf16), b2)

    def rep(shape):
        n = len(shape)
        idx = lambda b, q, _n=n: (0,) * _n
        if _SINGLE_BUFFER_WEIGHTS:
            # Replicated weights never change block index -> one buffer is enough.
            return pl.BlockSpec(shape, idx, pipeline_mode=pl.Buffered(1))
        return pl.BlockSpec(shape, idx)

    in_specs = [
        pl.BlockSpec((bt, S, E), lambda b, q: (b, 0, 0)),   # x (full sequence for K/V)
        rep((1, E)), rep((1, E)),                           # ln1 gamma/beta
        rep((E, 3 * E)), rep((1, 3 * E)),                   # fused Wqkv^T, bqkv
        rep((E, E)), rep((1, E)),                           # Wo^T, bo
        rep((1, E)), rep((1, E)),                           # ln2 gamma/beta
        rep((E, HID)), rep((1, HID)),                       # W1^T, b1
        rep((HID, E)), rep((1, E)),                         # W2^T, b2
    ]

    out = pl.pallas_call(
        encoder_kernel,
        out_shape=jax.ShapeDtypeStruct((Bp, S, E), x.dtype),
        grid_spec=pltpu.PrefetchScalarGridSpec(
            num_scalar_prefetch=0,
            grid=(nb, nq),
            in_specs=in_specs,
            out_specs=pl.BlockSpec((bt, Tq, E), lambda b, q: (b, q, 0)),
        ),
        compiler_params=pltpu.CompilerParams(
            dimension_semantics=("parallel", "parallel"),
            vmem_limit_bytes=_VMEM_LIMIT),
    )(x_in, *kparams)

    return out[:B] if Bp != B else out


# --------------------------------------------------------------------------------------
# Parameters / reference
# --------------------------------------------------------------------------------------
def init_params(key):
    """Deterministic synthetic parameters with PyTorch-default shapes (kept in f32)."""
    ks = jax.random.split(key, 10)
    sd = 0.02
    ln1_g = jnp.ones((1, EMB), jnp.float32)
    ln1_b = jnp.zeros((1, EMB), jnp.float32)
    ln2_g = jnp.ones((1, EMB), jnp.float32)
    ln2_b = jnp.zeros((1, EMB), jnp.float32)
    # nn.MultiheadAttention: in_proj_weight (3E, E), in_proj_bias (3E,)
    in_proj_w = jax.random.normal(ks[0], (3 * EMB, EMB), jnp.float32) * sd
    in_proj_b = jax.random.normal(ks[1], (3 * EMB,), jnp.float32) * sd
    wqkv = in_proj_w.T                              # (E, 3E): h @ Wqkv -> [q|k|v]
    bqkv = in_proj_b.reshape(1, 3 * EMB)
    # out_proj: Linear(E, E)
    wo = jax.random.normal(ks[2], (EMB, EMB), jnp.float32) * sd
    bo = jax.random.normal(ks[3], (EMB,), jnp.float32) * sd
    # MLP: Linear(E, HID), GELU, Linear(HID, E)
    w1 = jax.random.normal(ks[4], (HID, EMB), jnp.float32) * sd
    b1 = jax.random.normal(ks[5], (HID,), jnp.float32) * sd
    w2 = jax.random.normal(ks[6], (EMB, HID), jnp.float32) * sd
    b2 = jax.random.normal(ks[7], (EMB,), jnp.float32) * sd

    return (ln1_g, ln1_b,
            wqkv, bqkv,
            wo.T, bo.reshape(1, EMB),
            ln2_g, ln2_b,
            w1.T, b1.reshape(1, HID),
            w2.T, b2.reshape(1, EMB))


def reference(x, params):
    """Pure-JAX f32 reference mirroring the PyTorch eval-mode forward."""
    (ln1_g, ln1_b, wqkv, bqkv, wo_t, bo,
     ln2_g, ln2_b, w1_t, b1, w2_t, b2) = params

    def ln(v, g, b):
        mu = jnp.mean(v, axis=-1, keepdims=True)
        var = jnp.mean((v - mu) ** 2, axis=-1, keepdims=True)
        return (v - mu) / jnp.sqrt(var + LN_EPS) * g + b

    h = ln(x, ln1_g, ln1_b)
    qkv = h @ wqkv + bqkv
    q, k, v = jnp.split(qkv, 3, axis=-1)
    s = jnp.einsum('bqd,bkd->bqk', q, k) / math.sqrt(EMB // HEADS)
    p = jax.nn.softmax(s, axis=-1)
    a = jnp.einsum('bqk,bkd->bqd', p, v)
    x = x + (a @ wo_t + bo)
    h2 = ln(x, ln2_g, ln2_b)
    m = h2 @ w1_t + b1
    m = 0.5 * m * (1.0 + jax.lax.erf(m / math.sqrt(2.0)))
    m = m @ w2_t + b2
    return x + m


if __name__ == "__main__":
    key = jax.random.PRNGKey(0)
    kx, kp = jax.random.split(key)
    params = init_params(kp)

    # --- case 1: default (auto) tiling, single grid step -------------------------------
    B, S = 4, 8
    x = jax.random.normal(kx, (B, S, EMB), jnp.float32)
    out = jax.block_until_ready(transformer_encoder(x, params))
    ref = reference(x, params)
    assert out.shape == (B, S, EMB)
    err = jnp.max(jnp.abs(out - ref))
    # bf16 matmul operands + approx-recip softmax -> tolerance relaxed vs the f32 reference.
    assert jnp.allclose(out, ref, atol=3e-2, rtol=3e-2), f"max err {err}"

    # --- case 2: exercise batch padding + multi-step grid + q-chunk path ---------------
    B2, S2 = 5, 16
    x2 = jax.random.normal(jax.random.PRNGKey(1), (B2, S2, EMB), jnp.float32)
    out2 = jax.block_until_ready(transformer_encoder(x2, params, force_tiles=(2, 8)))
    ref2 = reference(x2, params)
    assert out2.shape == (B2, S2, EMB)
    err2 = jnp.max(jnp.abs(out2 - ref2))
    assert jnp.allclose(out2, ref2, atol=3e-2, rtol=3e-2), f"max err {err2}"

    print("KERNEL_OK")
</pallas_src>

<mosaic_0001>
module attributes {stable_mosaic.version = 11 : i64} {
  func.func @encoder_kernel(%arg0: i32, %arg1: i32, %arg2: memref<4x8x128xf32, #tpu.memory_space<vmem>>, %arg3: memref<1x128xf32, #tpu.memory_space<vmem>>, %arg4: memref<1x128xf32, #tpu.memory_space<vmem>>, %arg5: memref<128x384xbf16, #tpu.memory_space<vmem>>, %arg6: memref<1x384xf32, #tpu.memory_space<vmem>>, %arg7: memref<128x128xbf16, #tpu.memory_space<vmem>>, %arg8: memref<1x128xf32, #tpu.memory_space<vmem>>, %arg9: memref<1x128xf32, #tpu.memory_space<vmem>>, %arg10: memref<1x128xf32, #tpu.memory_space<vmem>>, %arg11: memref<128x512xbf16, #tpu.memory_space<vmem>>, %arg12: memref<1x512xf32, #tpu.memory_space<vmem>>, %arg13: memref<512x128xbf16, #tpu.memory_space<vmem>>, %arg14: memref<1x128xf32, #tpu.memory_space<vmem>>, %arg15: memref<4x8x128xf32, #tpu.memory_space<vmem>>) attributes {dimension_semantics = [#tpu.dimension_semantics<parallel>, #tpu.dimension_semantics<parallel>], iteration_bounds = array<i64: 1, 1>, scalar_prefetch = 0 : i64, scratch_operands = 0 : i64, tpu.core_type = #tpu.core_type<tc>, window_params = [{transform_indices = @transform_0, window_bounds = array<i64: 4, 8, 128>}, {pipeline_mode = #tpu.pipeline_mode<synchronous>, transform_indices = @transform_1, window_bounds = array<i64: 1, 128>}, {pipeline_mode = #tpu.pipeline_mode<synchronous>, transform_indices = @transform_2, window_bounds = array<i64: 1, 128>}, {pipeline_mode = #tpu.pipeline_mode<synchronous>, transform_indices = @transform_3, window_bounds = array<i64: 128, 384>}, {pipeline_mode = #tpu.pipeline_mode<synchronous>, transform_indices = @transform_4, window_bounds = array<i64: 1, 384>}, {pipeline_mode = #tpu.pipeline_mode<synchronous>, transform_indices = @transform_5, window_bounds = array<i64: 128, 128>}, {pipeline_mode = #tpu.pipeline_mode<synchronous>, transform_indices = @transform_6, window_bounds = array<i64: 1, 128>}, {pipeline_mode = #tpu.pipeline_mode<synchronous>, transform_indices = @transform_7, window_bounds = array<i64: 1, 128>}, {pipeline_mode = #tpu.pipeline_mode<synchronous>, transform_indices = @transform_8, window_bounds = array<i64: 1, 128>}, {pipeline_mode = #tpu.pipeline_mode<synchronous>, transform_indices = @transform_9, window_bounds = array<i64: 128, 512>}, {pipeline_mode = #tpu.pipeline_mode<synchronous>, transform_indices = @transform_10, window_bounds = array<i64: 1, 512>}, {pipeline_mode = #tpu.pipeline_mode<synchronous>, transform_indices = @transform_11, window_bounds = array<i64: 512, 128>}, {pipeline_mode = #tpu.pipeline_mode<synchronous>, transform_indices = @transform_12, window_bounds = array<i64: 1, 128>}, {transform_indices = @transform_13, window_bounds = array<i64: 4, 8, 128>}]} {
    %c0 = arith.constant 0 : index
    %c0_0 = arith.constant 0 : index
    %0 = vector.load %arg3[%c0, %c0_0] : memref<1x128xf32, #tpu.memory_space<vmem>>, vector<1x128xf32>
    %c0_1 = arith.constant 0 : index
    %c0_2 = arith.constant 0 : index
    %1 = vector.load %arg4[%c0_1, %c0_2] : memref<1x128xf32, #tpu.memory_space<vmem>>, vector<1x128xf32>
    %c0_3 = arith.constant 0 : index
    %c0_4 = arith.constant 0 : index
    %c0_5 = arith.constant 0 : index
    %2 = vector.load %arg2[%c0_3, %c0_4, %c0_5] : memref<4x8x128xf32, #tpu.memory_space<vmem>>, vector<4x8x128xf32>
    %3 = vector.shape_cast %2 : vector<4x8x128xf32> to vector<32x128xf32>
    %cst = arith.constant dense<0.000000e+00> : vector<32xf32>
    %4 = vector.multi_reduction <add>, %3, %cst [1] : vector<32x128xf32> to vector<32xf32>
    %5 = vector.shape_cast %4 : vector<32xf32> to vector<32x1xf32>
    %cst_6 = arith.constant 1.280000e+02 : f32
    %6 = vector.broadcast %cst_6 : f32 to vector<32x1xf32>
    %7 = arith.divf %5, %6 : vector<32x1xf32>
    %8 = vector.broadcast %7 : vector<32x1xf32> to vector<32x128xf32>
    %9 = arith.subf %3, %8 : vector<32x128xf32>
    %10 = arith.mulf %9, %9 : vector<32x128xf32>
    %cst_7 = arith.constant dense<0.000000e+00> : vector<32xf32>
    %11 = vector.multi_reduction <add>, %10, %cst_7 [1] : vector<32x128xf32> to vector<32xf32>
    %12 = vector.shape_cast %11 : vector<32xf32> to vector<32x1xf32>
    %cst_8 = arith.constant 1.280000e+02 : f32
    %13 = vector.broadcast %cst_8 : f32 to vector<32x1xf32>
    %14 = arith.divf %12, %13 : vector<32x1xf32>
    %15 = vector.broadcast %7 : vector<32x1xf32> to vector<32x128xf32>
    %16 = arith.subf %3, %15 : vector<32x128xf32>
    %cst_9 = arith.constant 9.99999974E-6 : f32
    %17 = vector.broadcast %cst_9 : f32 to vector<32x1xf32>
    %18 = arith.addf %14, %17 : vector<32x1xf32>
    %19 = math.rsqrt %18 : vector<32x1xf32>
    %20 = vector.broadcast %19 : vector<32x1xf32> to vector<32x128xf32>
    %21 = arith.mulf %16, %20 : vector<32x128xf32>
    %22 = vector.broadcast %0 : vector<1x128xf32> to vector<32x128xf32>
    %23 = arith.mulf %21, %22 : vector<32x128xf32>
    %24 = vector.broadcast %1 : vector<1x128xf32> to vector<32x128xf32>
    %25 = arith.addf %23, %24 : vector<32x128xf32>
    %26 = arith.truncf %25 : vector<32x128xf32> to vector<32x128xbf16>
    %c0_10 = arith.constant 0 : index
    %c128 = arith.constant 128 : index
    %27 = vector.load %arg5[%c0_10, %c128] : memref<128x384xbf16, #tpu.memory_space<vmem>>, vector<128x256xbf16>
    %cst_11 = arith.constant dense<0.000000e+00> : vector<32x256xf32>
    %28 = tpu.matmul %26, %27, %cst_11 {dimension_numbers = #tpu.dot_dimension_numbers<[1], [0], [0], [1], [0, 0, 1, 1], [], []>} : vector<32x128xbf16>, vector<128x256xbf16>, vector<32x256xf32> -> vector<32x256xf32>
    %c0_12 = arith.constant 0 : index
    %c128_13 = arith.constant 128 : index
    %29 = vector.load %arg6[%c0_12, %c128_13] : memref<1x384xf32, #tpu.memory_space<vmem>>, vector<1x256xf32>
    %30 = vector.broadcast %29 : vector<1x256xf32> to vector<32x256xf32>
    %31 = arith.addf %28, %30 : vector<32x256xf32>
    %32 = vector.shape_cast %31 : vector<32x256xf32> to vector<4x8x256xf32>
    %33 = arith.truncf %32 : vector<4x8x256xf32> to vector<4x8x256xbf16>
    %34 = vector.extract_strided_slice %33 {offsets = [0, 0, 0], sizes = [4, 8, 128], strides = [1, 1, 1]} : vector<4x8x256xbf16> to vector<4x8x128xbf16>
    %35 = vector.extract_strided_slice %33 {offsets = [0, 0, 128], sizes = [4, 8, 128], strides = [1, 1, 1]} : vector<4x8x256xbf16> to vector<4x8x128xbf16>
    %c0_14 = arith.constant 0 : index
    %c0_15 = arith.constant 0 : index
    %36 = vector.load %arg5[%c0_14, %c0_15] : memref<128x384xbf16, #tpu.memory_space<vmem>>, vector<128x128xbf16>
    %cst_16 = arith.constant dense<0.000000e+00> : vector<32x128xf32>
    %37 = tpu.matmul %26, %36, %cst_16 {dimension_numbers = #tpu.dot_dimension_numbers<[1], [0], [0], [1], [0, 0, 1, 1], [], []>} : vector<32x128xbf16>, vector<128x128xbf16>, vector<32x128xf32> -> vector<32x128xf32>
    %c0_17 = arith.constant 0 : index
    %c0_18 = arith.constant 0 : index
    %38 = vector.load %arg6[%c0_17, %c0_18] : memref<1x384xf32, #tpu.memory_space<vmem>>, vector<1x128xf32>
    %39 = vector.broadcast %38 : vector<1x128xf32> to vector<32x128xf32>
    %40 = arith.addf %37, %39 : vector<32x128xf32>
    %cst_19 = arith.constant 0.0883883461 : f32
    %41 = vector.broadcast %cst_19 : f32 to vector<32x128xf32>
    %42 = arith.mulf %40, %41 : vector<32x128xf32>
    %43 = vector.shape_cast %42 : vector<32x128xf32> to vector<4x8x128xf32>
    %44 = arith.truncf %43 : vector<4x8x128xf32> to vector<4x8x128xbf16>
    "tpu.trace_start"() <{level = 10 : i32, message = "bqd,bkd->bqk"}> : () -> ()
    %cst_20 = arith.constant dense<0.000000e+00> : vector<4x8x8xf32>
    %45 = tpu.matmul %44, %34, %cst_20 {dimension_numbers = #tpu.dot_dimension_numbers<[2], [2], [1], [1], [0, 0, 0, 1, 1, 1], [0], [0]>} : vector<4x8x128xbf16>, vector<4x8x128xbf16>, vector<4x8x8xf32> -> vector<4x8x8xf32>
    "tpu.trace_stop"() : () -> ()
    %cst_21 = arith.constant dense<0xFF800000> : vector<4x8xf32>
    %46 = vector.multi_reduction <maximumf>, %45, %cst_21 [2] : vector<4x8x8xf32> to vector<4x8xf32>
    %47 = vector.shape_cast %46 : vector<4x8xf32> to vector<4x8x1xf32>
    %48 = vector.broadcast %47 : vector<4x8x1xf32> to vector<4x8x8xf32>
    %49 = arith.subf %45, %48 : vector<4x8x8xf32>
    %50 = math.exp %49 : vector<4x8x8xf32>
    %cst_22 = arith.constant dense<0.000000e+00> : vector<4x8xf32>
    %51 = vector.multi_reduction <add>, %50, %cst_22 [2] : vector<4x8x8xf32> to vector<4x8xf32>
    %52 = vector.shape_cast %51 : vector<4x8xf32> to vector<4x8x1xf32>
    %53 = tpu.reciprocal %52 {approx = true} : vector<4x8x1xf32> -> vector<4x8x1xf32>
    %54 = vector.broadcast %53 : vector<4x8x1xf32> to vector<4x8x8xf32>
    %55 = arith.mulf %50, %54 : vector<4x8x8xf32>
    %56 = arith.truncf %55 : vector<4x8x8xf32> to vector<4x8x8xbf16>
    "tpu.trace_start"() <{level = 10 : i32, message = "bqk,bkd->bqd"}> : () -> ()
    %cst_23 = arith.constant dense<0.000000e+00> : vector<4x8x128xf32>
    %57 = tpu.matmul %56, %35, %cst_23 {dimension_numbers = #tpu.dot_dimension_numbers<[2], [1], [1], [2], [0, 0, 0, 1, 1, 2], [0], [0]>} : vector<4x8x8xbf16>, vector<4x8x128xbf16>, vector<4x8x128xf32> -> vector<4x8x128xf32>
    "tpu.trace_stop"() : () -> ()
    %58 = vector.shape_cast %57 : vector<4x8x128xf32> to vector<32x128xf32>
    %59 = arith.truncf %58 : vector<32x128xf32> to vector<32x128xbf16>
    %c0_24 = arith.constant 0 : index
    %c0_25 = arith.constant 0 : index
    %60 = vector.load %arg7[%c0_24, %c0_25] : memref<128x128xbf16, #tpu.memory_space<vmem>>, vector<128x128xbf16>
    %cst_26 = arith.constant dense<0.000000e+00> : vector<32x128xf32>
    %61 = tpu.matmul %59, %60, %cst_26 {dimension_numbers = #tpu.dot_dimension_numbers<[1], [0], [0], [1], [0, 0, 1, 1], [], []>} : vector<32x128xbf16>, vector<128x128xbf16>, vector<32x128xf32> -> vector<32x128xf32>
    %c0_27 = arith.constant 0 : index
    %c0_28 = arith.constant 0 : index
    %62 = vector.load %arg8[%c0_27, %c0_28] : memref<1x128xf32, #tpu.memory_space<vmem>>, vector<1x128xf32>
    %63 = vector.broadcast %62 : vector<1x128xf32> to vector<32x128xf32>
    %64 = arith.addf %61, %63 : vector<32x128xf32>
    %65 = arith.addf %3, %64 : vector<32x128xf32>
    %c0_29 = arith.constant 0 : index
    %c0_30 = arith.constant 0 : index
    %66 = vector.load %arg9[%c0_29, %c0_30] : memref<1x128xf32, #tpu.memory_space<vmem>>, vector<1x128xf32>
    %c0_31 = arith.constant 0 : index
    %c0_32 = arith.constant 0 : index
    %67 = vector.load %arg10[%c0_31, %c0_32] : memref<1x128xf32, #tpu.memory_space<vmem>>, vector<1x128xf32>
    %cst_33 = arith.constant dense<0.000000e+00> : vector<32xf32>
    %68 = vector.multi_reduction <add>, %65, %cst_33 [1] : vector<32x128xf32> to vector<32xf32>
    %69 = vector.shape_cast %68 : vector<32xf32> to vector<32x1xf32>
    %cst_34 = arith.constant 1.280000e+02 : f32
    %70 = vector.broadcast %cst_34 : f32 to vector<32x1xf32>
    %71 = arith.divf %69, %70 : vector<32x1xf32>
    %72 = vector.broadcast %71 : vector<32x1xf32> to vector<32x128xf32>
    %73 = arith.subf %65, %72 : vector<32x128xf32>
    %74 = arith.mulf %73, %73 : vector<32x128xf32>
    %cst_35 = arith.constant dense<0.000000e+00> : vector<32xf32>
    %75 = vector.multi_reduction <add>, %74, %cst_35 [1] : vector<32x128xf32> to vector<32xf32>
    %76 = vector.shape_cast %75 : vector<32xf32> to vector<32x1xf32>
    %cst_36 = arith.constant 1.280000e+02 : f32
    %77 = vector.broadcast %cst_36 : f32 to vector<32x1xf32>
    %78 = arith.divf %76, %77 : vector<32x1xf32>
    %79 = vector.broadcast %71 : vector<32x1xf32> to vector<32x128xf32>
    %80 = arith.subf %65, %79 : vector<32x128xf32>
    %cst_37 = arith.constant 9.99999974E-6 : f32
    %81 = vector.broadcast %cst_37 : f32 to vector<32x1xf32>
    %82 = arith.addf %78, %81 : vector<32x1xf32>
    %83 = math.rsqrt %82 : vector<32x1xf32>
    %84 = vector.broadcast %83 : vector<32x1xf32> to vector<32x128xf32>
    %85 = arith.mulf %80, %84 : vector<32x128xf32>
    %86 = vector.broadcast %66 : vector<1x128xf32> to vector<32x128xf32>
    %87 = arith.mulf %85, %86 : vector<32x128xf32>
    %88 = vector.broadcast %67 : vector<1x128xf32> to vector<32x128xf32>
    %89 = arith.addf %87, %88 : vector<32x128xf32>
    %90 = arith.truncf %89 : vector<32x128xf32> to vector<32x128xbf16>
    %c0_38 = arith.constant 0 : index
    %c0_39 = arith.constant 0 : index
    %91 = vector.load %arg11[%c0_38, %c0_39] : memref<128x512xbf16, #tpu.memory_space<vmem>>, vector<128x512xbf16>
    %cst_40 = arith.constant dense<0.000000e+00> : vector<32x512xf32>
    %92 = tpu.matmul %90, %91, %cst_40 {dimension_numbers = #tpu.dot_dimension_numbers<[1], [0], [0], [1], [0, 0, 1, 1], [], []>} : vector<32x128xbf16>, vector<128x512xbf16>, vector<32x512xf32> -> vector<32x512xf32>
    %c0_41 = arith.constant 0 : index
    %c0_42 = arith.constant 0 : index
    %93 = vector.load %arg12[%c0_41, %c0_42] : memref<1x512xf32, #tpu.memory_space<vmem>>, vector<1x512xf32>
    %94 = vector.broadcast %93 : vector<1x512xf32> to vector<32x512xf32>
    %95 = arith.addf %92, %94 : vector<32x512xf32>
    %cst_43 = arith.constant 5.000000e-01 : f32
    %96 = vector.broadcast %cst_43 : f32 to vector<32x512xf32>
    %97 = arith.mulf %96, %95 : vector<32x512xf32>
    %cst_44 = arith.constant 0.707106769 : f32
    %98 = vector.broadcast %cst_44 : f32 to vector<32x512xf32>
    %99 = arith.mulf %95, %98 : vector<32x512xf32>
    %100 = math.erf %99 : vector<32x512xf32>
    %cst_45 = arith.constant 1.000000e+00 : f32
    %101 = vector.broadcast %cst_45 : f32 to vector<32x512xf32>
    %102 = arith.addf %101, %100 : vector<32x512xf32>
    %103 = arith.mulf %97, %102 : vector<32x512xf32>
    %104 = arith.truncf %103 : vector<32x512xf32> to vector<32x512xbf16>
    %c0_46 = arith.constant 0 : index
    %c0_47 = arith.constant 0 : index
    %105 = vector.load %arg13[%c0_46, %c0_47] : memref<512x128xbf16, #tpu.memory_space<vmem>>, vector<512x128xbf16>
    %cst_48 = arith.constant dense<0.000000e+00> : vector<32x128xf32>
    %106 = tpu.matmul %104, %105, %cst_48 {dimension_numbers = #tpu.dot_dimension_numbers<[1], [0], [0], [1], [0, 0, 1, 1], [], []>} : vector<32x512xbf16>, vector<512x128xbf16>, vector<32x128xf32> -> vector<32x128xf32>
    %c0_49 = arith.constant 0 : index
    %c0_50 = arith.constant 0 : index
    %107 = vector.load %arg14[%c0_49, %c0_50] : memref<1x128xf32, #tpu.memory_space<vmem>>, vector<1x128xf32>
    %108 = vector.broadcast %107 : vector<1x128xf32> to vector<32x128xf32>
    %109 = arith.addf %106, %108 : vector<32x128xf32>
    %110 = arith.addf %65, %109 : vector<32x128xf32>
    %111 = vector.shape_cast %110 : vector<32x128xf32> to vector<4x8x128xf32>
    %c0_51 = arith.constant 0 : index
    %c0_52 = arith.constant 0 : index
    %c0_53 = arith.constant 0 : index
    %112 = vector.load %arg15[%c0_51, %c0_52, %c0_53] : memref<4x8x128xf32, #tpu.memory_space<vmem>>, vector<4x8x128xf32>
    tpu.vector_store %arg15[%c0_51, %c0_52, %c0_53], %111 {strides = array<i32>} : memref<4x8x128xf32, #tpu.memory_space<vmem>>, vector<4x8x128xf32>,
    return
  }
  func.func @transform_0(%arg0: i32, %arg1: i32) -> (i32, i32, i32) {
    %c0_i32 = arith.constant 0 : i32
    %c0_i32_0 = arith.constant 0 : i32
    %c0_i32_1 = arith.constant 0 : i32
    return %arg0, %c0_i32, %c0_i32_0 : i32, i32, i32
  }
  func.func @transform_1(%arg0: i32, %arg1: i32) -> (i32, i32) {
    %c0_i32 = arith.constant 0 : i32
    %c0_i32_0 = arith.constant 0 : i32
    %c0_i32_1 = arith.constant 0 : i32
    return %c0_i32, %c0_i32_0 : i32, i32
  }
  func.func @transform_2(%arg0: i32, %arg1: i32) -> (i32, i32) {
    %c0_i32 = arith.constant 0 : i32
    %c0_i32_0 = arith.constant 0 : i32
    %c0_i32_1 = arith.constant 0 : i32
    return %c0_i32, %c0_i32_0 : i32, i32
  }
  func.func @transform_3(%arg0: i32, %arg1: i32) -> (i32, i32) {
    %c0_i32 = arith.constant 0 : i32
    %c0_i32_0 = arith.constant 0 : i32
    %c0_i32_1 = arith.constant 0 : i32
    return %c0_i32, %c0_i32_0 : i32, i32
  }
  func.func @transform_4(%arg0: i32, %arg1: i32) -> (i32, i32) {
    %c0_i32 = arith.constant 0 : i32
    %c0_i32_0 = arith.constant 0 : i32
    %c0_i32_1 = arith.constant 0 : i32
    return %c0_i32, %c0_i32_0 : i32, i32
  }
  func.func @transform_5(%arg0: i32, %arg1: i32) -> (i32, i32) {
    %c0_i32 = arith.constant 0 : i32
    %c0_i32_0 = arith.constant 0 : i32
    %c0_i32_1 = arith.constant 0 : i32
    return %c0_i32, %c0_i32_0 : i32, i32
  }
  func.func @transform_6(%arg0: i32, %arg1: i32) -> (i32, i32) {
    %c0_i32 = arith.constant 0 : i32
    %c0_i32_0 = arith.constant 0 : i32
    %c0_i32_1 = arith.constant 0 : i32
    return %c0_i32, %c0_i32_0 : i32, i32
  }
  func.func @transform_7(%arg0: i32, %arg1: i32) -> (i32, i32) {
    %c0_i32 = arith.constant 0 : i32
    %c0_i32_0 = arith.constant 0 : i32
    %c0_i32_1 = arith.constant 0 : i32
    return %c0_i32, %c0_i32_0 : i32, i32
  }
  func.func @transform_8(%arg0: i32, %arg1: i32) -> (i32, i32) {
    %c0_i32 = arith.constant 0 : i32
    %c0_i32_0 = arith.constant 0 : i32
    %c0_i32_1 = arith.constant 0 : i32
    return %c0_i32, %c0_i32_0 : i32, i32
  }
  func.func @transform_9(%arg0: i32, %arg1: i32) -> (i32, i32) {
    %c0_i32 = arith.constant 0 : i32
    %c0_i32_0 = arith.constant 0 : i32
    %c0_i32_1 = arith.constant 0 : i32
    return %c0_i32, %c0_i32_0 : i32, i32
  }
  func.func @transform_10(%arg0: i32, %arg1: i32) -> (i32, i32) {
    %c0_i32 = arith.constant 0 : i32
    %c0_i32_0 = arith.constant 0 : i32
    %c0_i32_1 = arith.constant 0 : i32
    return %c0_i32, %c0_i32_0 : i32, i32
  }
  func.func @transform_11(%arg0: i32, %arg1: i32) -> (i32, i32) {
    %c0_i32 = arith.constant 0 : i32
    %c0_i32_0 = arith.constant 0 : i32
    %c0_i32_1 = arith.constant 0 : i32
    return %c0_i32, %c0_i32_0 : i32, i32
  }
  func.func @transform_12(%arg0: i32, %arg1: i32) -> (i32, i32) {
    %c0_i32 = arith.constant 0 : i32
    %c0_i32_0 = arith.constant 0 : i32
    %c0_i32_1 = arith.constant 0 : i32
    return %c0_i32, %c0_i32_0 : i32, i32
  }
  func.func @transform_13(%arg0: i32, %arg1: i32) -> (i32, i32, i32) {
    %c0_i32 = arith.constant 0 : i32
    %c0_i32_0 = arith.constant 0 : i32
    return %arg0, %arg1, %c0_i32 : i32, i32, i32
  }
}

</mosaic_0001>

<bundles_post_ra>
// kernel: transformer_encoder.1
= control target key start
LH: loop header
LB: loop body
LE: loop exit
PB: predicated region body
PF: predicated region fallthrough
CT: control target
= control target key end

     0   :  { %s2904_s0 = inlined_call_operand.vmem [shape: f32[4,8,128], index: 0, kind: input, shape index: {}]   ;;  %s2905_s1 = inlined_call_operand.vmem [shape: f32[1,128], index: 1, kind: input, shape index: {}]   ;;  %s2906_s2 = inlined_call_operand.vmem [shape: f32[1,128], index: 2, kind: input, shape index: {}]   ;;  %s2907_s3 = inlined_call_operand.vmem [shape: bf16[128,384], index: 3, kind: input, shape index: {}]   ;;  %s2908_s4 = inlined_call_operand.vmem [shape: f32[1,384], index: 4, kind: input, shape index: {}]   ;;  %s2909_s5 = inlined_call_operand.vmem [shape: bf16[128,128], index: 5, kind: input, shape index: {}]   ;;  %s2910_s6 = inlined_call_operand.vmem [shape: f32[1,128], index: 6, kind: input, shape index: {}]   ;;  %s2911_s7 = inlined_call_operand.vmem [shape: f32[1,128], index: 7, kind: input, shape index: {}]   ;;  %s2912_s8 = inlined_call_operand.vmem [shape: f32[1,128], index: 8, kind: input, shape index: {}]   ;;  %s2913_s9 = inlined_call_operand.vmem [shape: bf16[128,512], index: 9, kind: input, shape index: {}]   ;;  %s2914_s10 = inlined_call_operand.vmem [shape: f32[1,512], index: 10, kind: input, shape index: {}]   ;;  %s2915_s11 = inlined_call_operand.vmem [shape: bf16[512,128], index: 11, kind: input, shape index: {}]   ;;  %s2916_s12 = inlined_call_operand.vmem [shape: f32[1,128], index: 12, kind: input, shape index: {}]   ;;  %s2917_s13 = inlined_call_operand.hbm [shape: f32[4,8,128], index: 13, kind: output, shape index: {}]  }
   0x1   :  { %v2375_v0 = vld [vmem:[%s2904_s0] sm:$0xff]  ;;  %v2380_v1 = vld [vmem:[%s2904_s0 + $0x10] sm:$0xff]  ;;  %v2385_v2 = vld [vmem:[%s2904_s0 + $0x8] sm:$0xff] }
   0x2   :  { %52 = vadd.xlane.f32.xlu0 %v2375_v0  ;;  %56 = vadd.xlane.f32.xlu1 %v2380_v1  ;;  %v2392_v3 = vld [vmem:[%s2904_s0 + $0x18] sm:$0xff] }
   0x3   :  { %v2090_v4 = vld [vmem:[%s2907_s3 + $0xb0] ss:$12 sps:$4 sm:$0xff]   ;;  %v2092_v5 = vld [vmem:[%s2907_s3 + $0xac] ss:$12 sps:$4 sm:$0xff]  }
   0x4   :  { %227 = vmatprep.subr.bf16.mxu0 %v2090_v4 }
   0x5   :  { %228 = vmatpush1.bf16.msra.mxu0 %v2092_v5 }
   0x6   :  { %54 = vadd.xlane.f32.xlu0 %v2385_v2  ;;  %58 = vadd.xlane.f32.xlu1 %v2392_v3 }
   0x7   :  { %18 = vsyncpa [#allocation3], 0  ;;  %v2093_v22 = vld [vmem:[%s2907_s3 + $0x98] ss:$12 sps:$4 sm:$0xff]   ;;  %v2095_v23 = vld [vmem:[%s2907_s3 + $0xa8] ss:$12 sps:$4 sm:$0xff]  }
   0x8   :  { %v2096_v24 = vld [vmem:[%s2907_s3 + $0x94] ss:$12 sps:$4 sm:$0xff]   ;;  %229 = vmatprep.subr.bf16.mxu0 %v2093_v22  ;;  %1996 = vmatprep.subr.bf16.mxu1 %v2095_v23  ;;  %v2099_v26 = vld [vmem:[%s2907_s3 + $0x90] ss:$12 sps:$4 sm:$0xff]   ;;  %v2103_v29 = vld [vmem:[%s2907_s3 + $0x78] ss:$12 sps:$4 sm:$0xff]  }
   0x9   :  { %230 = vmatpush1.bf16.msra.mxu0 %v2096_v24  ;;  %1997 = vmatpush3.bf16.msra.mxu1 %v2095_v23  ;;  %v2097_v25 = vld [vmem:[%s2907_s3 + $0x80] ss:$12 sps:$4 sm:$0xff]   ;;  %v2100_v27 = vld [vmem:[%s2907_s3 + $0x7c] ss:$12 sps:$4 sm:$0xff]   ;;  %v2104_v30 = vld [vmem:[%s2907_s3 + $0x64] ss:$12 sps:$4 sm:$0xff]  }
   0xa   :  { %231 = vmatprep.subr.bf16.mxu0 %v2097_v25  ;;  %1998 = vmatprep.subr.bf16.mxu1 %v2099_v26  ;;  %v2101_v28 = vld [vmem:[%s2907_s3 + $0x68] ss:$12 sps:$4 sm:$0xff]   ;;  %v2105_v31 = vld [vmem:[%s2907_s3 + $0x50] ss:$12 sps:$4 sm:$0xff]   ;;  %v2107_v32 = vld [vmem:[%s2907_s3 + $0x60] ss:$12 sps:$4 sm:$0xff]  }
   0xb   :  { %v2108_v33 = vld [vmem:[%s2907_s3 + $0x4c] ss:$12 sps:$4 sm:$0xff]   ;;  %v2111_v35 = vld [vmem:[%s2907_s3 + $0x48] ss:$12 sps:$4 sm:$0xff]   ;;  %v2115_v38 = vld [vmem:[%s2907_s3 + $0x30] ss:$12 sps:$4 sm:$0xff]  }
   0xc   :  { %v2109_v34 = vld [vmem:[%s2907_s3 + $0x38] ss:$12 sps:$4 sm:$0xff]   ;;  %v2112_v36 = vld [vmem:[%s2907_s3 + $0x34] ss:$12 sps:$4 sm:$0xff]   ;;  %v2296_v39 = vmov 0   ;;  %vm2298_vm0 = vmmov 0  }
   0xd   :  { %232 = vmatpush1.bf16.msra.mxu0 %v2100_v27  ;;  %1999 = vmatpush3.bf16.msra.mxu1 %v2099_v26  ;;  %v2113_v37 = vld [vmem:[%s2907_s3 + $0x20] ss:$12 sps:$4 sm:$0xff]   ;;  %v2116_v40 = vld [vmem:[%s2907_s3 + $0x1c] ss:$12 sps:$4 sm:$0xff]   ;;  %v2119_v42 = vld [vmem:[%s2907_s3 + $0x18] ss:$12 sps:$4 sm:$0xff]  }
   0xe   :  { %233 = vmatprep.subr.bf16.mxu0 %v2101_v28  ;;  %2000 = vmatprep.subr.bf16.mxu1 %v2103_v29  ;;  %v2117_v41 = vld [vmem:[%s2907_s3 + $0x8] ss:$12 sps:$4 sm:$0xff]   ;;  %v2120_v43 = vld [vmem:[%s2907_s3 + $0x4] ss:$12 sps:$4 sm:$0xff]   ;;  %v2121_v44 = vld [vmem:[%s2907_s3] ss:$12 sps:$4 sm:$0xff]  }
   0xf   :  { %259 = vmatprep.mubr.bf16.mxu0 %v2296_v39  ;;  %v1797_v59 = vld [vmem:[%s2905_s1] ss:$0 sm:$0xff]  ;;  %vm628_vm1 = vcmask 1043456   ;;  %vm576_vm2 = vcmask 64512  }
  0x10   :  { %v1798_v4 = vld [vmem:[%s2906_s2] ss:$0 sm:$0xff] }
  0x11   :  { %234 = vmatpush1.bf16.msra.mxu0 %v2104_v30  ;;  %2001 = vmatpush3.bf16.msra.mxu1 %v2103_v29 }
  0x12   :  { %235 = vmatprep.subr.bf16.mxu0 %v2105_v31  ;;  %2002 = vmatprep.subr.bf16.mxu1 %v2107_v32 }
  0x15   :  { %236 = vmatpush1.bf16.msra.mxu0 %v2108_v33  ;;  %2003 = vmatpush3.bf16.msra.mxu1 %v2107_v32  ;;  %v1815_v32 = vld [vmem:[%s2908_s4] ss:$0 sm:$0xff] }
  0x16   :  { %237 = vmatprep.subr.bf16.mxu0 %v2109_v34  ;;  %2004 = vmatprep.subr.bf16.mxu1 %v2111_v35 }
  0x19   :  { %238 = vmatpush1.bf16.msra.mxu0 %v2112_v36  ;;  %2005 = vmatpush3.bf16.msra.mxu1 %v2111_v35 }
  0x1a   :  { %239 = vmatprep.subr.bf16.mxu0 %v2113_v37  ;;  %2006 = vmatprep.subr.bf16.mxu1 %v2115_v38 }
  0x1d   :  { %240 = vmatpush1.bf16.msra.mxu0 %v2116_v40  ;;  %2007 = vmatpush3.bf16.msra.mxu1 %v2115_v38 }
  0x1e   :  { %241 = vmatprep.subr.bf16.mxu0 %v2117_v41  ;;  %2008 = vmatprep.subr.bf16.mxu1 %v2119_v42 }
  0x21   :  { %242 = vmatpush1.bf16.msra.mxu0 %v2120_v43  ;;  %2009 = vmatpush3.bf16.msra.mxu1 %v2119_v42 }
  0x22   :  { %2010 = vmatprep.subr.bf16.mxu1 %v2121_v44 }
  0x25   :  { %2011 = vmatpush3.bf16.msra.mxu1 %v2121_v44 }
  0x8b   :  { %v53_v6 = vpop.xlane.xlu0 %52  ;;  %v57_v7 = vpop.xlane.xlu1 %56 }
  0x8c   :  { %v61_v8 = vmul.f32 0.0078125, %v53_v6  ;;  %v63_v9 = vmul.f32 0.0078125, %v57_v7 }
  0x8e   :  { %v2403_v10 = vsub.f32 %v2375_v0, %v61_v8  ;;  %v2406_v11 = vsub.f32 %v2380_v1, %v63_v9 }
  0x8f   :  { %v55_v12 = vpop.xlane.xlu0 %54  ;;  %v59_v13 = vpop.xlane.xlu1 %58 }
  0x90   :  { %v62_v14 = vmul.f32 0.0078125, %v55_v12  ;;  %v69_v15 = vmul.f32 %v2403_v10, %v2403_v10  ;;  %v64_v16 = vmul.f32 0.0078125, %v59_v13  ;;  %v71_v19 = vmul.f32 %v2406_v11, %v2406_v11 }
  0x92   :  { %v2411_v17 = vsub.f32 %v2385_v2, %v62_v14  ;;  %73 = vadd.xlane.f32.xlu0 %v69_v15  ;;  %v2414_v18 = vsub.f32 %v2392_v3, %v64_v16 }
  0x94   :  { %v70_v20 = vmul.f32 %v2411_v17, %v2411_v17  ;;  %v72_v21 = vmul.f32 %v2414_v18, %v2414_v18 }
  0x96   :  { %77 = vadd.xlane.f32.xlu0 %v71_v19  ;;  %75 = vadd.xlane.f32.xlu1 %v70_v20  ;;  %v2297_v19 = vmov 0.0  }
  0x97   :  { %2016 = vmatprep.subr.bf16.mxu0 %v2297_v19  ;;  %2028 = vmatprep.subr.bf16.mxu1 %v2297_v19 }
  0x9a   :  { %79 = vadd.xlane.f32.xlu1 %v72_v21  ;;  %v135_v21 = vld [vmem:[%s2908_s4 + $0x1] sm:$0x3] }
 0x11b   :  { %v74_v45 = vpop.xlane.xlu0 %73 }
 0x11c   :  { %v81_v46 = vmul.f32 0.0078125, %v74_v45 }
 0x11e   :  { %v85_v47 = vadd.f32 1e-05, %v81_v46 }
 0x11f   :  { %v76_v48 = vpop.xlane.xlu1 %75  ;;  %v78_v49 = vpop.xlane.xlu0 %77 }
 0x120   :  { %2210 = vrsqrt.f32 %v85_v47  ;;  %v82_v50 = vmul.f32 0.0078125, %v76_v48  ;;  %v83_v51 = vmul.f32 0.0078125, %v78_v49 }
 0x122   :  { %v86_v52 = vadd.f32 1e-05, %v82_v50  ;;  %v87_v53 = vadd.f32 1e-05, %v83_v51 }
 0x123   :  { %v80_v54 = vpop.xlane.xlu1 %79 }
 0x124   :  { %2212 = vrsqrt.f32 %v86_v52  ;;  %v84_v55 = vmul.f32 0.0078125, %v80_v54 }
 0x125   :  { %2214 = vrsqrt.f32 %v87_v53 }
 0x126   :  { %v88_v56 = vadd.f32 1e-05, %v84_v55 }
 0x128   :  { %2216 = vrsqrt.f32 %v88_v56 }
 0x12d   :  { %v2211_v57 = vpop.eup %2210 }
 0x12e   :  { %v93_v58 = vmul.f32 %v2211_v57, %v2403_v10 }
 0x130   :  { %v103_v63 = vmul.f32 %v1797_v59, %v93_v58 }
 0x131   :  { %v2213_v60 = vpop.eup %2212 }
 0x132   :  { %v2215_v61 = vpop.eup %2214  ;;  %v94_v62 = vmul.f32 %v2213_v60, %v2411_v17  ;;  %v113_v8 = vadd.f32 %v1798_v4, %v103_v63 }
 0x133   :  { %v95_v5 = vmul.f32 %v2215_v61, %v2406_v11  ;;  %v137_v11 = vlaneseq }
 0x134   :  { %v104_v6 = vmul.f32 %v1797_v59, %v94_v62 }
 0x135   :  { %v2217_v7 = vpop.eup %2216  ;;  %v105_v12 = vmul.f32 %v1797_v59, %v95_v5 }
 0x136   :  { %v114_v9 = vadd.f32 %v1798_v4, %v104_v6  ;;  %v96_v10 = vmul.f32 %v2217_v7, %v2414_v18  ;;  %v2506_v18 = vshrl.u32 %v137_v11, 7 }
 0x137   :  { %v115_v15 = vadd.f32 %v1798_v4, %v105_v12 }
 0x138   :  { %v117_v13 = vpack.c.bf16 %v114_v9, %v113_v8  ;;  %v106_v14 = vmul.f32 %v1797_v59, %v96_v10  ;;  %v139_v20 = vsub.s32 0, %v2506_v18  ;;  %v143_v27 = vsub.s32 1, %v2506_v18 }
 0x13a   :  { %260 = vmatmul.mubr.bf16.vlgmr.msra.gmra.mxu0 %v117_v13  ;;  %2012 = vmatprep.mubr.bf16.mxu1 %v117_v13  ;;  %v116_v16 = vadd.f32 %v1798_v4, %v106_v14  ;;  %v140_v22 = vrot.slane %v135_v21, %v139_v20  ;;  %v144_v33 = vrot.slane %v135_v21, %v143_v27 }
 0x13b   :  { %269 = vmatprep.mubr.bf16.mxu0 %v2296_v39 }
 0x13c   :  { %v118_v17 = vpack.c.bf16 %v116_v16, %v115_v15 }
 0x13e   :  { %2013 = vmatmul.mubr.bf16.vlgmr.msra.gmra.mxu1 %v118_v17 }
 0x13f   :  { %2030 = vmatprep.mubr.msk.bf16.mxu1 %vm2298_vm0, %v2297_v19 }
 0x142   :  { %270 = vmatmul.mubr.bf16.gmra.mxu0 %v118_v17 }
 0x143   :  { %2018 = vmatprep.mubr.msk.bf16.mxu0 %vm2298_vm0, %v2297_v19 }
 0x1fa   :  { %v261_v23 = vpop.f32.mrf.mxu0 }
 0x1fb   :  { %v262_v24 = vadd.f32 %v261_v23, %v140_v22 }
 0x1fc   :  { %v263_v25 = vpop.f32.mrf.mxu0 }
 0x1fd   :  { %v280_v26 = vpack.c.bf16 %v262_v24, %v262_v24  ;;  %v264_v46 = vadd.f32 %v263_v25, %v144_v33 }
 0x1fe   :  { %v265_v28 = vpop.f32.mrf.mxu0  ;;  %v2014_v29 = vpop.f32.mrf.mxu1 }
 0x1ff   :  { %2017 = vmatpush3.bf16.xpose.msra.mxu0 %v280_v26  ;;  %v266_v37 = vadd.f32 %v265_v28, %v140_v22  ;;  %v402_v40 = vadd.f32 %v2014_v29, %v1815_v32  ;;  %v281_v56 = vpack.c.bf16 %v264_v46, %v264_v46 }
 0x200   :  { %v267_v30 = vpop.f32.mrf.mxu0  ;;  %v393_v31 = vpop.f32.mrf.mxu1  ;;  %2022 = vmatprep.subr.bf16.mxu0 %v2297_v19 }
 0x201   :  { %v394_v34 = vadd.f32 %v1815_v32, %v393_v31  ;;  %v282_v50 = vpack.c.bf16 %v266_v37, %v266_v37  ;;  %v410_v52 = vmul.f32 0.088388346, %v402_v40  ;;  %v630_v62 = vsel %vm628_vm1, %v281_v56, 0 }
 0x202   :  { %v271_v35 = vpop.f32.mrf.mxu0  ;;  %v2015_v36 = vpop.f32.mrf.mxu1  ;;  %v268_v6 = vadd.f32 %v267_v30, %v144_v33 }
 0x203   :  { %v272_v38 = vadd.f32 %v271_v35, %v140_v22  ;;  %v408_v41 = vmul.f32 0.088388346, %v394_v34  ;;  %v414_v60 = vpack.c.bf16 %v410_v52, %v410_v52  ;;  %v405_v63 = vadd.f32 %v2015_v36, %v1815_v32 }
 0x204   :  { %v273_v42 = vpop.f32.mrf.mxu0  ;;  %v396_v43 = vpop.f32.mrf.mxu1  ;;  %v283_v8 = vpack.c.bf16 %v268_v6, %v268_v6 }
 0x205   :  { %v284_v44 = vpack.c.bf16 %v272_v38, %v272_v38  ;;  %v274_v45 = vadd.f32 %v273_v42, %v144_v33  ;;  %v412_v47 = vpack.c.bf16 %v408_v41, %v408_v41  ;;  %v397_v48 = vadd.f32 %v1815_v32, %v396_v43 }
 0x206   :  { %v275_v49 = vpop.f32.mrf.mxu0  ;;  %v411_v7 = vmul.f32 0.088388346, %v405_v63  ;;  %v676_v10 = vsel %vm628_vm1, %v283_v8, 0 }
 0x207   :  { %v285_v51 = vpack.c.bf16 %v274_v45, %v274_v45  ;;  %2029 = vmatpush3.bf16.xpose.msra.mxu1 %v284_v44  ;;  %2019 = vmatmul.mubr.bf16.vlgmr.msra.gmra.mxu0 %v412_v47  ;;  %v409_v57 = vmul.f32 0.088388346, %v397_v48  ;;  %v276_v58 = vadd.f32 %v275_v49, %v140_v22 }
 0x208   :  { %v277_v53 = vpop.f32.mrf.mxu0  ;;  %2040 = vmatprep.subr.bf16.mxu1 %v2297_v19  ;;  %2023 = vmatpush3.bf16.xpose.msra.mxu0 %v282_v50  ;;  %v415_v9 = vpack.c.bf16 %v411_v7, %v411_v7 }
 0x209   :  { %v2523_v54 = vsel %vm628_vm1, %v285_v51, 0  ;;  %v278_v55 = vadd.f32 %v277_v53, %v144_v33  ;;  %2024 = vmatprep.mubr.msk.bf16.mxu0 %vm2298_vm0, %v2297_v19  ;;  %2034 = vmatprep.subr.bf16.mxu0 %v2297_v19  ;;  %v413_v4 = vpack.c.bf16 %v409_v57, %v409_v57  ;;  %v286_v5 = vpack.c.bf16 %v276_v58, %v276_v58 }
 0x20b   :  { %v287_v59 = vpack.c.bf16 %v278_v55, %v278_v55 }
 0x20d   :  { %v2529_v61 = vsel %vm628_vm1, %v287_v59, 0 }
 0x20e   :  { %2031 = vmatmul.mubr.bf16.vlgmr.msra.gmra.mxu1 %v414_v60 }
 0x20f   :  { %2041 = vmatpush3.bf16.msra.mxu1 %v630_v62  ;;  %2042 = vmatprep.mubr.msk.bf16.mxu1 %vm2298_vm0, %v2297_v19 }
 0x210   :  { %2025 = vmatmul.mubr.bf16.vlgmr.msra.gmra.mxu0 %v413_v4  ;;  %2052 = vmatprep.subr.bf16.mxu1 %v2297_v19 }
 0x211   :  { %2035 = vmatpush3.bf16.xpose.msra.mxu0 %v286_v5  ;;  %2036 = vmatprep.mubr.msk.bf16.mxu0 %vm2298_vm0, %v2297_v19  ;;  %v2122_v5 = vld [vmem:[%s2909_s5 + $0x38] sm:$0xff]  }
 0x212   :  { %2046 = vmatprep.subr.bf16.mxu0 %v2297_v19 }
 0x218   :  { %2037 = vmatmul.mubr.bf16.vlgmr.msra.gmra.mxu0 %v415_v9 }
 0x219   :  { %2047 = vmatpush3.bf16.msra.mxu0 %v676_v10  ;;  %2048 = vmatprep.mubr.msk.bf16.mxu0 %vm2298_vm0, %v2297_v19 }
 0x21a   :  { %2058 = vmatprep.subr.bf16.mxu0 %v2297_v19 }
 0x2c7   :  { %v450_v12 = vpop.f32.mrf.mxu0 }
 0x2c8   :  { %v577_v13 = vsel %vm576_vm2, %v450_v12, -inf }
 0x2c9   :  { %578 = vmax.xlane.f32.xlu0 %v577_v13  ;;  %v2020_v14 = vpop.f32.mrf.mxu0  ;;  %v2123_v13 = vld [vmem:[%s2909_s5 + $0x30] sm:$0xff]  }
 0x2ca   :  { %v2124_v14 = vld [vmem:[%s2909_s5 + $0x28] sm:$0xff]  }
 0x2cb   :  { %v453_v15 = vpop.f32.mrf.mxu0 }
 0x2cd   :  { %v2021_v16 = vpop.f32.mrf.mxu0 }
 0x2ce   :  { %v530_v17 = vpop.f32.mrf.mxu1 }
 0x2cf   :  { %v583_v11 = vsel %vm576_vm2, %v530_v17, -inf }
 0x2d0   :  { %v490_v21 = vpop.f32.mrf.mxu0  ;;  %v2032_v22 = vpop.f32.mrf.mxu1  ;;  %584 = vmax.xlane.f32.xlu0 %v583_v11  ;;  %v2128_v11 = vld [vmem:[%s2909_s5 + $0x8] sm:$0xff]  }
 0x2d1   :  { %v580_v23 = vsel %vm576_vm2, %v490_v21, -inf }
 0x2d2   :  { %581 = vmax.xlane.f32.xlu1 %v580_v23  ;;  %v2026_v24 = vpop.f32.mrf.mxu0  ;;  %v533_v25 = vpop.f32.mrf.mxu1 }
 0x2d4   :  { %v493_v26 = vpop.f32.mrf.mxu0  ;;  %v2033_v28 = vpop.f32.mrf.mxu1 }
 0x2d6   :  { %v2027_v29 = vpop.f32.mrf.mxu0 }
 0x2d8   :  { %v570_v30 = vpop.f32.mrf.mxu0 }
 0x2d9   :  { %v586_v31 = vsel %vm576_vm2, %v570_v30, -inf }
 0x2da   :  { %587 = vmax.xlane.f32.xlu1 %v586_v31  ;;  %v2038_v32 = vpop.f32.mrf.mxu0 }
 0x2dc   :  { %v573_v33 = vpop.f32.mrf.mxu0 }
 0x2de   :  { %v2039_v34 = vpop.f32.mrf.mxu0 }
 0x352   :  { %v579_v35 = vpop.xlane.xlu0 %578 }
 0x353   :  { %v589_v36 = vsub.f32 %v450_v12, %v579_v35 }
 0x355   :  { %v593_v37 = vmul.f32 1.442695, %v589_v36 }
 0x357   :  { %2218 = vpow2.f32 %v593_v37 }
 0x359   :  { %v585_v38 = vpop.xlane.xlu0 %584 }
 0x35a   :  { %v591_v40 = vsub.f32 %v530_v17, %v585_v38  ;;  %v2125_v17 = vld [vmem:[%s2909_s5 + $0x20] sm:$0xff]  }
 0x35b   :  { %v582_v41 = vpop.xlane.xlu1 %581 }
 0x35c   :  { %v597_v42 = vmul.f32 1.442695, %v591_v40  ;;  %v590_v43 = vsub.f32 %v490_v21, %v582_v41  ;;  %v2129_v21 = vld [vmem:[%s2909_s5] sm:$0xff]  }
 0x35e   :  { %2220 = vpow2.f32 %v597_v42  ;;  %v595_v44 = vmul.f32 1.442695, %v590_v43  ;;  %v1828_v43 = vld [vmem:[%s2910_s6] ss:$0 sm:$0xff] }
 0x360   :  { %2222 = vpow2.f32 %v595_v44 }
 0x363   :  { %v588_v45 = vpop.xlane.xlu1 %587 }
 0x364   :  { %v592_v46 = vsub.f32 %v570_v30, %v588_v45  ;;  %v2219_v47 = vpop.eup %2218 }
 0x365   :  { %v601_v49 = vsel %vm576_vm2, %v2219_v47, 0.0 }
 0x366   :  { %v599_v48 = vmul.f32 1.442695, %v592_v46  ;;  %602 = vadd.xlane.f32.xlu0 %v601_v49 }
 0x368   :  { %2224 = vpow2.f32 %v599_v48 }
 0x36b   :  { %v2221_v50 = vpop.eup %2220 }
 0x36c   :  { %v607_v51 = vsel %vm576_vm2, %v2221_v50, 0.0 }
 0x36d   :  { %v2223_v52 = vpop.eup %2222  ;;  %608 = vadd.xlane.f32.xlu0 %v607_v51 }
 0x36e   :  { %v604_v53 = vsel %vm576_vm2, %v2223_v52, 0.0 }
 0x36f   :  { %605 = vadd.xlane.f32.xlu1 %v604_v53 }
 0x375   :  { %v2225_v55 = vpop.eup %2224 }
 0x376   :  { %v610_v56 = vsel %vm576_vm2, %v2225_v55, 0.0 }
 0x377   :  { %611 = vadd.xlane.f32.xlu1 %v610_v56  ;;  %v2135_v56 = vld [vmem:[%s2913_s9 + $0xec] ss:$16 sps:$4 sm:$0xff]  }
 0x3ef   :  { %v603_v57 = vpop.xlane.xlu0 %602 }
 0x3f0   :  { %2226 = vrcp.f32 %v603_v57 }
 0x3f6   :  { %v609_v58 = vpop.xlane.xlu0 %608 }
 0x3f7   :  { %2228 = vrcp.f32 %v609_v58 }
 0x3f8   :  { %v606_v59 = vpop.xlane.xlu1 %605 }
 0x3f9   :  { %2230 = vrcp.f32 %v606_v59 }
 0x3fd   :  { %v2227_v60 = vpop.eup %2226 }
 0x3fe   :  { %v617_v62 = vmul.f32 %v2227_v60, %v2219_v47 }
 0x400   :  { %v612_v63 = vpop.xlane.xlu1 %611  ;;  %v621_v4 = vpack.c.bf16 %v617_v62, %v617_v62 }
 0x401   :  { %2232 = vrcp.f32 %v612_v63 }
 0x402   :  { %2043 = vmatmul.mubr.msk.bf16.vlgmr.msra.gmra.mxu1 %vm576_vm2, %v621_v4 }
 0x403   :  { %2053 = vmatpush3.bf16.msra.mxu1 %v2523_v54  ;;  %2054 = vmatprep.mubr.msk.bf16.mxu1 %vm2298_vm0, %v2297_v19 }
 0x404   :  { %v2229_v6 = vpop.eup %2228  ;;  %2064 = vmatprep.subr.bf16.mxu1 %v2122_v5 }
 0x405   :  { %v619_v7 = vmul.f32 %v2229_v6, %v2221_v50 }
 0x406   :  { %v2231_v8 = vpop.eup %2230 }
 0x407   :  { %v618_v9 = vmul.f32 %v2231_v8, %v2223_v52  ;;  %v623_v10 = vpack.c.bf16 %v619_v7, %v619_v7 }
 0x409   :  { %v622_v12 = vpack.c.bf16 %v618_v9, %v618_v9 }
 0x40a   :  { %2055 = vmatmul.mubr.msk.bf16.vlgmr.msra.gmra.mxu1 %vm576_vm2, %v623_v10 }
 0x40b   :  { %2049 = vmatmul.mubr.msk.bf16.vlgmr.msra.gmra.mxu0 %vm576_vm2, %v622_v12  ;;  %2065 = vmatpush3.bf16.msra.mxu1 %v2122_v5 }
 0x40c   :  { %2059 = vmatpush3.bf16.msra.mxu0 %v2529_v61  ;;  %2060 = vmatprep.mubr.msk.bf16.mxu0 %vm2298_vm0, %v2297_v19  ;;  %v2126_v19 = vld [vmem:[%s2909_s5 + $0x18] sm:$0xff]   ;;  %v2127_v61 = vld [vmem:[%s2909_s5 + $0x10] sm:$0xff]  }
 0x40d   :  { %2066 = vmatprep.subr.bf16.mxu1 %v2123_v13 }
 0x40e   :  { %v2233_v54 = vpop.eup %2232 }
 0x40f   :  { %v620_v15 = vmul.f32 %v2233_v54, %v2225_v55  ;;  %2067 = vmatpush3.bf16.msra.mxu1 %v2123_v13  ;;  %v2138_v54 = vld [vmem:[%s2913_s9 + $0xc4] ss:$16 sps:$4 sm:$0xff]  }
 0x410   :  { %2068 = vmatprep.subr.bf16.mxu1 %v2124_v14 }
 0x411   :  { %v624_v16 = vpack.c.bf16 %v620_v15, %v620_v15  ;;  %v2136_v15 = vld [vmem:[%s2913_s9 + $0xc0] ss:$16 sps:$4 sm:$0xff]  }
 0x413   :  { %2061 = vmatmul.mubr.msk.bf16.vlgmr.msra.gmra.mxu0 %vm576_vm2, %v624_v16  ;;  %2069 = vmatpush3.bf16.msra.mxu1 %v2124_v14  ;;  %v2141_v14 = vld [vmem:[%s2913_s9 + $0xcc] ss:$16 sps:$4 sm:$0xff]   ;;  %v2139_v16 = vld [vmem:[%s2913_s9 + $0xc8] ss:$16 sps:$4 sm:$0xff]  }
 0x414   :  { %1250 = vmatprep.mubr.bf16.mxu0 %v2296_v39  ;;  %2070 = vmatprep.subr.bf16.mxu1 %v2125_v17 }
 0x417   :  { %2071 = vmatpush3.bf16.msra.mxu1 %v2125_v17  ;;  %v2144_v17 = vld [vmem:[%s2913_s9 + $0xa4] ss:$16 sps:$4 sm:$0xff]  }
 0x418   :  { %2072 = vmatprep.subr.bf16.mxu1 %v2126_v19 }
 0x41b   :  { %2073 = vmatpush3.bf16.msra.mxu1 %v2126_v19  ;;  %v2147_v19 = vld [vmem:[%s2913_s9 + $0xac] ss:$16 sps:$4 sm:$0xff]  }
 0x41c   :  { %2074 = vmatprep.subr.bf16.mxu1 %v2127_v61 }
 0x41f   :  { %2075 = vmatpush3.bf16.msra.mxu1 %v2127_v61  ;;  %v2142_v61 = vld [vmem:[%s2913_s9 + $0xa0] ss:$16 sps:$4 sm:$0xff]  }
 0x420   :  { %2076 = vmatprep.subr.bf16.mxu1 %v2128_v11 }
 0x423   :  { %2077 = vmatpush3.bf16.msra.mxu1 %v2128_v11  ;;  %v2145_v11 = vld [vmem:[%s2913_s9 + $0xa8] ss:$16 sps:$4 sm:$0xff]  }
 0x424   :  { %2078 = vmatprep.subr.bf16.mxu1 %v2129_v21 }
 0x427   :  { %2079 = vmatpush3.bf16.msra.mxu1 %v2129_v21  ;;  %v2150_v21 = vld [vmem:[%s2913_s9 + $0x84] ss:$16 sps:$4 sm:$0xff]  }
 0x428   :  { %1271 = vmatprep.subr.bf16.mxu1 %v2135_v56 }
 0x4c2   :  { %v666_v22 = vpop.f32.mrf.mxu1 }
 0x4c4   :  { %v2044_v23 = vpop.f32.mrf.mxu1 }
 0x4c5   :  { %v2148_v23 = vld [vmem:[%s2913_s9 + $0x80] ss:$16 sps:$4 sm:$0xff]  }
 0x4c6   :  { %v669_v24 = vpop.f32.mrf.mxu1 }
 0x4c7   :  { %v2151_v24 = vld [vmem:[%s2913_s9 + $0x88] ss:$16 sps:$4 sm:$0xff]  }
 0x4c8   :  { %v2045_v25 = vpop.f32.mrf.mxu1 }
 0x4c9   :  { %v2154_v25 = vld [vmem:[%s2913_s9 + $0x60] ss:$16 sps:$4 sm:$0xff]  }
 0x4ca   :  { %v758_v28 = vpop.f32.mrf.mxu1 }
 0x4cb   :  { %v712_v26 = vpop.f32.mrf.mxu0 }
 0x4cc   :  { %v810_v29 = vpack.c.bf16 %v712_v26, %v666_v22  ;;  %v2056_v31 = vpop.f32.mrf.mxu1  ;;  %v2153_v22 = vld [vmem:[%s2913_s9 + $0x8c] ss:$16 sps:$4 sm:$0xff]   ;;  %v2156_v26 = vld [vmem:[%s2913_s9 + $0x64] ss:$16 sps:$4 sm:$0xff]  }
 0x4cd   :  { %v2050_v30 = vpop.f32.mrf.mxu0  ;;  %v2165_v31 = vld [vmem:[%s2913_s9 + $0x4c] ss:$16 sps:$4 sm:$0xff]  }
 0x4ce   :  { %2080 = vmatprep.mubr.bf16.mxu1 %v810_v29  ;;  %v761_v33 = vpop.f32.mrf.mxu1  ;;  %v2159_v29 = vld [vmem:[%s2913_s9 + $0x6c] ss:$16 sps:$4 sm:$0xff]   ;;  %v2162_v30 = vld [vmem:[%s2913_s9 + $0x44] ss:$16 sps:$4 sm:$0xff]  }
 0x4cf   :  { %v715_v32 = vpop.f32.mrf.mxu0  ;;  %v2163_v33 = vld [vmem:[%s2913_s9 + $0x48] ss:$16 sps:$4 sm:$0xff]  }
 0x4d0   :  { %v2057_v35 = vpop.f32.mrf.mxu1  ;;  %v2160_v32 = vld [vmem:[%s2913_s9 + $0x40] ss:$16 sps:$4 sm:$0xff]  }
 0x4d1   :  { %v2051_v34 = vpop.f32.mrf.mxu0  ;;  %v2171_v35 = vld [vmem:[%s2913_s9 + $0x2c] ss:$16 sps:$4 sm:$0xff]  }
 0x4d2   :  { %v2168_v34 = vld [vmem:[%s2913_s9 + $0x24] ss:$16 sps:$4 sm:$0xff]  }
 0x4d3   :  { %v804_v36 = vpop.f32.mrf.mxu0 }
 0x4d4   :  { %v811_v37 = vpack.c.bf16 %v804_v36, %v758_v28  ;;  %v2157_v28 = vld [vmem:[%s2913_s9 + $0x68] ss:$16 sps:$4 sm:$0xff]   ;;  %v2166_v36 = vld [vmem:[%s2913_s9 + $0x20] ss:$16 sps:$4 sm:$0xff]  }
 0x4d5   :  { %v2062_v38 = vpop.f32.mrf.mxu0 }
 0x4d6   :  { %2081 = vmatmul.mubr.bf16.vlgmr.msra.gmra.mxu1 %v811_v37  ;;  %v2169_v37 = vld [vmem:[%s2913_s9 + $0x28] ss:$16 sps:$4 sm:$0xff]   ;;  %v2174_v38 = vld [vmem:[%s2913_s9 + $0x4] ss:$16 sps:$4 sm:$0xff]  }
 0x4d7   :  { %v807_v40 = vpop.f32.mrf.mxu0  ;;  %1303 = vmatprep.mubr.bf16.mxu1 %v2296_v39 }
 0x4d8   :  { %v2177_v40 = vld [vmem:[%s2913_s9 + $0xc] ss:$16 sps:$4 sm:$0xff]  }
 0x4d9   :  { %v2063_v41 = vpop.f32.mrf.mxu0 }
 0x4da   :  { %v2172_v41 = vld [vmem:[%s2913_s9] ss:$16 sps:$4 sm:$0xff]  }
 0x596   :  { %v2082_v42 = vpop.f32.mrf.mxu1 }
 0x597   :  { %v926_v47 = vadd.f32 %v2082_v42, %v1828_v43  ;;  %v2175_v42 = vld [vmem:[%s2913_s9 + $0x8] ss:$16 sps:$4 sm:$0xff]  }
 0x598   :  { %v917_v44 = vpop.f32.mrf.mxu1 }
 0x599   :  { %v918_v45 = vadd.f32 %v1828_v43, %v917_v44  ;;  %v2594_v51 = vadd.f32 %v926_v47, %v2380_v1  ;;  %v2132_v1 = vld [vmem:[%s2913_s9 + $0xe4] ss:$16 sps:$4 sm:$0xff]  }
 0x59a   :  { %v2083_v46 = vpop.f32.mrf.mxu1  ;;  %1218 = vmatprep.subr.bf16.mxu0 %v2132_v1 }
 0x59b   :  { %v2590_v48 = vadd.f32 %v918_v45, %v2375_v0  ;;  %v929_v52 = vadd.f32 %v2083_v46, %v1828_v43  ;;  %v2130_v0 = vld [vmem:[%s2913_s9 + $0xe0] ss:$16 sps:$4 sm:$0xff]  }
 0x59c   :  { %v920_v49 = vpop.f32.mrf.mxu1  ;;  %1219 = vmatpush1.bf16.msra.mxu0 %v2130_v0 }
 0x59d   :  { %v921_v50 = vadd.f32 %v1828_v43, %v920_v49  ;;  %938 = vadd.xlane.f32.xlu0 %v2590_v48  ;;  %v2602_v55 = vadd.f32 %v929_v52, %v2392_v3  ;;  %1220 = vmatprep.subr.bf16.mxu0 %v2138_v54 }
 0x59f   :  { %v2597_v53 = vadd.f32 %v921_v50, %v2385_v2  ;;  %v2133_v2 = vld [vmem:[%s2913_s9 + $0xe8] ss:$16 sps:$4 sm:$0xff]  }
 0x5a0   :  { %1272 = vmatpush1.bf16.msra.mxu1 %v2133_v2  ;;  %1221 = vmatpush1.bf16.msra.mxu0 %v2136_v15 }
 0x5a1   :  { %940 = vadd.xlane.f32.xlu1 %v2597_v53  ;;  %942 = vadd.xlane.f32.xlu0 %v2594_v51 }
 0x5a2   :  { %1273 = vmatprep.subr.bf16.mxu1 %v2141_v14  ;;  %1222 = vmatprep.subr.bf16.mxu0 %v2144_v17 }
 0x5a4   :  { %1274 = vmatpush1.bf16.msra.mxu1 %v2139_v16  ;;  %1223 = vmatpush1.bf16.msra.mxu0 %v2142_v61  ;;  %v2180_v61 = vld [vmem:[%s2915_s11 + $0x38] sm:$0xff]  }
 0x5a5   :  { %944 = vadd.xlane.f32.xlu1 %v2602_v55  ;;  %1275 = vmatprep.subr.bf16.mxu1 %v2147_v19 }
 0x5a6   :  { %1224 = vmatprep.subr.bf16.mxu0 %v2150_v21  ;;  %v2183_v21 = vld [vmem:[%s2915_s11 + $0xf0] sm:$0xff]  }
 0x5a8   :  { %1276 = vmatpush1.bf16.msra.mxu1 %v2145_v11  ;;  %1225 = vmatpush1.bf16.msra.mxu0 %v2148_v23  ;;  %v2182_v11 = vld [vmem:[%s2915_s11 + $0x70] sm:$0xff]  }
 0x5a9   :  { %1277 = vmatprep.subr.bf16.mxu1 %v2153_v22  ;;  %1226 = vmatprep.subr.bf16.mxu0 %v2156_v26  ;;  %v2184_v22 = vld [vmem:[%s2915_s11 + $0x30] sm:$0xff]   ;;  %v2188_v26 = vld [vmem:[%s2915_s11 + $0x28] sm:$0xff]  }
 0x5aa   :  { %v2185_v23 = vld [vmem:[%s2915_s11 + $0xb0] sm:$0xff]  }
 0x5ac   :  { %1278 = vmatpush1.bf16.msra.mxu1 %v2151_v24  ;;  %1227 = vmatpush1.bf16.msra.mxu0 %v2154_v25  ;;  %v2186_v24 = vld [vmem:[%s2915_s11 + $0x68] sm:$0xff]  }
 0x5ad   :  { %1279 = vmatprep.subr.bf16.mxu1 %v2159_v29  ;;  %1228 = vmatprep.subr.bf16.mxu0 %v2162_v30  ;;  %v2187_v25 = vld [vmem:[%s2915_s11 + $0xe8] sm:$0xff]   ;;  %v2190_v29 = vld [vmem:[%s2915_s11 + $0x60] sm:$0xff]  }
 0x5ae   :  { %v2191_v30 = vld [vmem:[%s2915_s11 + $0xe0] sm:$0xff]  }
 0x5b0   :  { %1280 = vmatpush1.bf16.msra.mxu1 %v2157_v28  ;;  %1229 = vmatpush1.bf16.msra.mxu0 %v2160_v32  ;;  %v2189_v28 = vld [vmem:[%s2915_s11 + $0xa8] sm:$0xff]   ;;  %v2193_v32 = vld [vmem:[%s2915_s11 + $0xa0] sm:$0xff]  }
 0x5b1   :  { %1281 = vmatprep.subr.bf16.mxu1 %v2165_v31  ;;  %1230 = vmatprep.subr.bf16.mxu0 %v2168_v34  ;;  %v2192_v31 = vld [vmem:[%s2915_s11 + $0x20] sm:$0xff]   ;;  %v2195_v34 = vld [vmem:[%s2915_s11 + $0xd8] sm:$0xff]  }
 0x5b4   :  { %1282 = vmatpush1.bf16.msra.mxu1 %v2163_v33  ;;  %1231 = vmatpush1.bf16.msra.mxu0 %v2166_v36  ;;  %v2194_v33 = vld [vmem:[%s2915_s11 + $0x58] sm:$0xff]  }
 0x5b5   :  { %1283 = vmatprep.subr.bf16.mxu1 %v2171_v35  ;;  %1232 = vmatprep.subr.bf16.mxu0 %v2174_v38  ;;  %v2196_v35 = vld [vmem:[%s2915_s11 + $0x18] sm:$0xff]   ;;  %v2199_v38 = vld [vmem:[%s2915_s11 + $0xd0] sm:$0xff]  }
 0x5b6   :  { %v2197_v36 = vld [vmem:[%s2915_s11 + $0x98] sm:$0xff]  }
 0x5b8   :  { %1284 = vmatpush1.bf16.msra.mxu1 %v2169_v37  ;;  %1233 = vmatpush1.bf16.msra.mxu0 %v2172_v41  ;;  %v2198_v37 = vld [vmem:[%s2915_s11 + $0x50] sm:$0xff]  }
 0x5b9   :  { %1285 = vmatprep.subr.bf16.mxu1 %v2177_v40  ;;  %v2200_v40 = vld [vmem:[%s2915_s11 + $0x10] sm:$0xff]  }
 0x5ba   :  { %v2201_v41 = vld [vmem:[%s2915_s11 + $0x90] sm:$0xff]  }
 0x5bc   :  { %1286 = vmatpush1.bf16.msra.mxu1 %v2175_v42  ;;  %v2202_v42 = vld [vmem:[%s2915_s11 + $0x48] sm:$0xff]  }
 0x626   :  { %v939_v3 = vpop.xlane.xlu0 %938 }
 0x627   :  { %v946_v57 = vmul.f32 0.0078125, %v939_v3 }
 0x629   :  { %v2618_v58 = vsub.f32 %v2590_v48, %v946_v57 }
 0x62a   :  { %v941_v59 = vpop.xlane.xlu1 %940  ;;  %v943_v60 = vpop.xlane.xlu0 %942 }
 0x62b   :  { %v947_v62 = vmul.f32 0.0078125, %v941_v59  ;;  %v948_v63 = vmul.f32 0.0078125, %v943_v60  ;;  %v954_v4 = vmul.f32 %v2618_v58, %v2618_v58  ;;  %v1837_v59 = vld [vmem:[%s2911_s7] ss:$0 sm:$0xff] }
 0x62d   :  { %v2623_v5 = vsub.f32 %v2597_v53, %v947_v62  ;;  %v2626_v6 = vsub.f32 %v2594_v51, %v948_v63  ;;  %958 = vadd.xlane.f32.xlu0 %v954_v4 }
 0x62e   :  { %v945_v7 = vpop.xlane.xlu1 %944 }
 0x62f   :  { %v949_v8 = vmul.f32 0.0078125, %v945_v7  ;;  %v955_v9 = vmul.f32 %v2623_v5, %v2623_v5  ;;  %v956_v10 = vmul.f32 %v2626_v6, %v2626_v6  ;;  %v1838_v7 = vld [vmem:[%s2912_s8] ss:$0 sm:$0xff] }
 0x631   :  { %v2633_v12 = vsub.f32 %v2602_v55, %v949_v8  ;;  %960 = vadd.xlane.f32.xlu1 %v955_v9  ;;  %962 = vadd.xlane.f32.xlu0 %v956_v10 }
 0x633   :  { %v957_v13 = vmul.f32 %v2633_v12, %v2633_v12 }
 0x635   :  { %964 = vadd.xlane.f32.xlu1 %v957_v13 }
 0x6b6   :  { %v959_v43 = vpop.xlane.xlu0 %958 }
 0x6b7   :  { %v966_v44 = vmul.f32 0.0078125, %v959_v43  ;;  %v2203_v43 = vld [vmem:[%s2915_s11 + $0xc8] sm:$0xff]  }
 0x6b9   :  { %v970_v45 = vadd.f32 1e-05, %v966_v44  ;;  %v2204_v44 = vld [vmem:[%s2915_s11 + $0x8] sm:$0xff]  }
 0x6ba   :  { %v961_v46 = vpop.xlane.xlu1 %960  ;;  %v963_v47 = vpop.xlane.xlu0 %962 }
 0x6bb   :  { %2234 = vrsqrt.f32 %v970_v45  ;;  %v967_v49 = vmul.f32 0.0078125, %v961_v46  ;;  %v968_v50 = vmul.f32 0.0078125, %v963_v47  ;;  %v2205_v45 = vld [vmem:[%s2915_s11 + $0x88] sm:$0xff]   ;;  %v2206_v46 = vld [vmem:[%s2915_s11 + $0x40] sm:$0xff]  }
 0x6bc   :  { %v2207_v47 = vld [vmem:[%s2915_s11 + $0xc0] sm:$0xff]  }
 0x6bd   :  { %v971_v52 = vadd.f32 1e-05, %v967_v49  ;;  %v972_v0 = vadd.f32 1e-05, %v968_v50  ;;  %v2208_v49 = vld [vmem:[%s2915_s11] sm:$0xff]  }
 0x6be   :  { %v965_v1 = vpop.xlane.xlu1 %964  ;;  %v2209_v50 = vld [vmem:[%s2915_s11 + $0x80] sm:$0xff]  }
 0x6bf   :  { %2236 = vrsqrt.f32 %v971_v52  ;;  %v969_v2 = vmul.f32 0.0078125, %v965_v1  ;;  %v1048_v52 = vsub.s32 2, %v2506_v18  ;;  %v1052_v1 = vsub.s32 3, %v2506_v18 }
 0x6c0   :  { %2238 = vrsqrt.f32 %v972_v0  ;;  %v1036_v0 = vld [vmem:[%s2914_s10] sm:$0xf] }
 0x6c1   :  { %v973_v56 = vadd.f32 1e-05, %v969_v2  ;;  %v1041_v2 = vrot.slane %v1036_v0, %v139_v20 }
 0x6c3   :  { %2240 = vrsqrt.f32 %v973_v56  ;;  %v1049_v56 = vrot.slane %v1036_v0, %v1048_v52 }
 0x6c8   :  { %v2235_v3 = vpop.eup %2234 }
 0x6c9   :  { %v978_v57 = vmul.f32 %v2235_v3, %v2618_v58 }
 0x6cb   :  { %v988_v63 = vmul.f32 %v1837_v59, %v978_v57 }
 0x6cc   :  { %v2237_v60 = vpop.eup %2236 }
 0x6cd   :  { %v979_v62 = vmul.f32 %v2237_v60, %v2623_v5  ;;  %v2239_v4 = vpop.eup %2238  ;;  %v998_v10 = vadd.f32 %v1838_v7, %v988_v63  ;;  %v1053_v60 = vrot.slane %v1036_v0, %v1052_v1 }
 0x6ce   :  { %v980_v54 = vmul.f32 %v2239_v4, %v2626_v6  ;;  %v2178_v6 = vld [vmem:[%s2915_s11 + $0x78] sm:$0xff]  }
 0x6cf   :  { %v989_v8 = vmul.f32 %v1837_v59, %v979_v62  ;;  %1940 = vmatprep.subr.bf16.mxu0 %v2178_v6 }
 0x6d0   :  { %v2241_v9 = vpop.eup %2240  ;;  %v990_v16 = vmul.f32 %v1837_v59, %v980_v54 }
 0x6d1   :  { %v999_v13 = vadd.f32 %v1838_v7, %v989_v8  ;;  %v981_v58 = vmul.f32 %v2241_v9, %v2633_v12  ;;  %v2179_v12 = vld [vmem:[%s2915_s11 + $0xf8] sm:$0xff]  }
 0x6d2   :  { %v1000_v17 = vadd.f32 %v1838_v7, %v990_v16  ;;  %1968 = vmatprep.subr.bf16.mxu1 %v2179_v12 }
 0x6d3   :  { %v1002_v14 = vpack.c.bf16 %v999_v13, %v998_v10  ;;  %v991_v15 = vmul.f32 %v1837_v59, %v981_v58  ;;  %v1045_v59 = vrot.slane %v1036_v0, %v143_v27 }
 0x6d5   :  { %1251 = vmatmul.mubr.bf16.vlgmr.msra.gmra.mxu0 %v1002_v14  ;;  %1304 = vmatmul.mubr.bf16.vlgmr.msra.gmra.mxu1 %v1002_v14  ;;  %v1001_v5 = vadd.f32 %v1838_v7, %v991_v15 }
 0x6d6   :  { %1260 = vmatprep.mubr.bf16.mxu0 %v2296_v39  ;;  %1313 = vmatprep.mubr.bf16.mxu1 %v2296_v39  ;;  %v2181_v39 = vld [vmem:[%s2915_s11 + $0xb8] sm:$0xff]  }
 0x6d7   :  { %v1003_v19 = vpack.c.bf16 %v1001_v5, %v1000_v17  ;;  %1941 = vmatpush3.bf16.msra.mxu0 %v2180_v61  ;;  %1969 = vmatpush3.bf16.msra.mxu1 %v2181_v39 }
 0x6d8   :  { %1942 = vmatprep.subr.bf16.mxu0 %v2182_v11  ;;  %1970 = vmatprep.subr.bf16.mxu1 %v2183_v21 }
 0x6db   :  { %1943 = vmatpush3.bf16.msra.mxu0 %v2184_v22  ;;  %1971 = vmatpush3.bf16.msra.mxu1 %v2185_v23 }
 0x6dc   :  { %1944 = vmatprep.subr.bf16.mxu0 %v2186_v24  ;;  %1972 = vmatprep.subr.bf16.mxu1 %v2187_v25 }
 0x6dd   :  { %1261 = vmatmul.mubr.bf16.gmra.mxu0 %v1003_v19  ;;  %1314 = vmatmul.mubr.bf16.gmra.mxu1 %v1003_v19 }
 0x6df   :  { %1945 = vmatpush3.bf16.msra.mxu0 %v2188_v26  ;;  %1973 = vmatpush3.bf16.msra.mxu1 %v2189_v28 }
 0x6e0   :  { %1946 = vmatprep.subr.bf16.mxu0 %v2190_v29  ;;  %1974 = vmatprep.subr.bf16.mxu1 %v2191_v30 }
 0x6e3   :  { %1947 = vmatpush3.bf16.msra.mxu0 %v2192_v31  ;;  %1975 = vmatpush3.bf16.msra.mxu1 %v2193_v32 }
 0x6e4   :  { %1948 = vmatprep.subr.bf16.mxu0 %v2194_v33  ;;  %1976 = vmatprep.subr.bf16.mxu1 %v2195_v34 }
 0x6e7   :  { %1949 = vmatpush3.bf16.msra.mxu0 %v2196_v35  ;;  %1977 = vmatpush3.bf16.msra.mxu1 %v2197_v36 }
 0x6e8   :  { %1950 = vmatprep.subr.bf16.mxu0 %v2198_v37  ;;  %1978 = vmatprep.subr.bf16.mxu1 %v2199_v38 }
 0x6eb   :  { %1951 = vmatpush3.bf16.msra.mxu0 %v2200_v40  ;;  %1979 = vmatpush3.bf16.msra.mxu1 %v2201_v41 }
 0x6ec   :  { %1952 = vmatprep.subr.bf16.mxu0 %v2202_v42  ;;  %1980 = vmatprep.subr.bf16.mxu1 %v2203_v43 }
 0x6ef   :  { %1953 = vmatpush3.bf16.msra.mxu0 %v2204_v44  ;;  %1981 = vmatpush3.bf16.msra.mxu1 %v2205_v45 }
 0x6f0   :  { %1954 = vmatprep.subr.bf16.mxu0 %v2206_v46  ;;  %1982 = vmatprep.subr.bf16.mxu1 %v2207_v47 }
 0x6f3   :  { %1955 = vmatpush3.bf16.msra.mxu0 %v2208_v49  ;;  %1983 = vmatpush3.bf16.msra.mxu1 %v2209_v50 }
 0x795   :  { %v1252_v3 = vpop.f32.mrf.mxu0  ;;  %v1305_v57 = vpop.f32.mrf.mxu1 }
 0x796   :  { %v2838_v62 = vadd.f32 %v1252_v3, %v1041_v2  ;;  %v2840_v63 = vadd.f32 %v1305_v57, %v1049_v56 }
 0x797   :  { %v1254_v4 = vpop.f32.mrf.mxu0  ;;  %v1307_v7 = vpop.f32.mrf.mxu1 }
 0x798   :  { %v1340_v8 = vmul.f32 0.70710677, %v2838_v62  ;;  %v1342_v9 = vmul.f32 0.70710677, %v2840_v63  ;;  %v1255_v10 = vadd.f32 %v1254_v4, %v1045_v59  ;;  %v2844_v13 = vadd.f32 %v1307_v7, %v1053_v60 }
 0x799   :  { %v1256_v20 = vpop.f32.mrf.mxu0  ;;  %v1309_v54 = vpop.f32.mrf.mxu1  ;;  %v1324_v0 = vmul.f32 0.5, %v2838_v62 }
 0x79a   :  { %v2846_v58 = vadd.f32 %v1256_v20, %v1041_v2  ;;  %v2848_v18 = vadd.f32 %v1309_v54, %v1049_v56  ;;  %2242 = verf.f32 %v1340_v8  ;;  %v1341_v27 = vmul.f32 0.70710677, %v1255_v10 }
 0x79b   :  { %v1258_v14 = vpop.f32.mrf.mxu0  ;;  %v1311_v15 = vpop.f32.mrf.mxu1  ;;  %2244 = verf.f32 %v1342_v9  ;;  %v1343_v16 = vmul.f32 0.70710677, %v2844_v13  ;;  %v1325_v1 = vmul.f32 0.5, %v1255_v10 }
 0x79c   :  { %v1344_v5 = vmul.f32 0.70710677, %v2846_v58  ;;  %2246 = verf.f32 %v1341_v27  ;;  %v1346_v17 = vmul.f32 0.70710677, %v2848_v18  ;;  %v1259_v19 = vadd.f32 %v1258_v14, %v1045_v59 }
 0x79d   :  { %v2853_v6 = vadd.f32 %v1311_v15, %v1053_v60  ;;  %v1262_v12 = vpop.f32.mrf.mxu0  ;;  %v1315_v61 = vpop.f32.mrf.mxu1  ;;  %2248 = verf.f32 %v1343_v16  ;;  %v1330_v9 = vmul.f32 0.5, %v2848_v18  ;;  %v1327_v14 = vmul.f32 0.5, %v2844_v13 }
 0x79e   :  { %v2855_v39 = vadd.f32 %v1262_v12, %v1041_v2  ;;  %v2857_v11 = vadd.f32 %v1315_v61, %v1049_v56  ;;  %2250 = verf.f32 %v1344_v5  ;;  %v1345_v21 = vmul.f32 0.70710677, %v1259_v19 }
 0x79f   :  { %v1264_v22 = vpop.f32.mrf.mxu0  ;;  %v1317_v23 = vpop.f32.mrf.mxu1  ;;  %2252 = verf.f32 %v1346_v17  ;;  %v1347_v24 = vmul.f32 0.70710677, %v2853_v6  ;;  %v1329_v20 = vmul.f32 0.5, %v1259_v19  ;;  %v1331_v62 = vmul.f32 0.5, %v2853_v6 }
 0x7a0   :  { %v1348_v25 = vmul.f32 0.70710677, %v2855_v39  ;;  %2254 = verf.f32 %v1345_v21  ;;  %v1350_v26 = vmul.f32 0.70710677, %v2857_v11  ;;  %v2862_v28 = vadd.f32 %v1264_v22, %v1045_v59 }
 0x7a1   :  { %v1266_v29 = vpop.f32.mrf.mxu0  ;;  %v1319_v30 = vpop.f32.mrf.mxu1  ;;  %2256 = verf.f32 %v1347_v24  ;;  %v2864_v31 = vadd.f32 %v1317_v23, %v1053_v60  ;;  %v1326_v5 = vmul.f32 0.5, %v2840_v63 }
 0x7a2   :  { %v2866_v32 = vadd.f32 %v1266_v29, %v1041_v2  ;;  %v2868_v33 = vadd.f32 %v1319_v30, %v1049_v56  ;;  %2258 = verf.f32 %v1348_v25  ;;  %v1349_v34 = vmul.f32 0.70710677, %v2862_v28 }
 0x7a3   :  { %v1268_v35 = vpop.f32.mrf.mxu0  ;;  %v1321_v36 = vpop.f32.mrf.mxu1  ;;  %2260 = verf.f32 %v1350_v26  ;;  %v1351_v37 = vmul.f32 0.70710677, %v2864_v31 }
 0x7a4   :  { %2262 = verf.f32 %v1349_v34  ;;  %v1352_v38 = vmul.f32 0.70710677, %v2866_v32  ;;  %v1354_v40 = vmul.f32 0.70710677, %v2868_v33  ;;  %v2874_v41 = vadd.f32 %v1268_v35, %v1045_v59 }
 0x7a5   :  { %2264 = verf.f32 %v1351_v37  ;;  %v2876_v42 = vadd.f32 %v1321_v36, %v1053_v60  ;;  %v1328_v60 = vmul.f32 0.5, %v2846_v58  ;;  %v1332_v34 = vmul.f32 0.5, %v2855_v39 }
 0x7a6   :  { %2266 = verf.f32 %v1352_v38  ;;  %v1353_v44 = vmul.f32 0.70710677, %v2874_v41  ;;  %v1333_v38 = vmul.f32 0.5, %v2862_v28  ;;  %v1335_v39 = vmul.f32 0.5, %v2864_v31 }
 0x7a7   :  { %v2243_v43 = vpop.eup %2242  ;;  %2268 = verf.f32 %v1354_v40  ;;  %v1355_v46 = vmul.f32 0.70710677, %v2876_v42 }
 0x7a8   :  { %v2245_v45 = vpop.eup %2244  ;;  %2270 = verf.f32 %v1353_v44  ;;  %v1372_v57 = vadd.f32 1.0, %v2243_v43  ;;  %v1336_v43 = vmul.f32 0.5, %v2866_v32 }
 0x7a9   :  { %v2247_v47 = vpop.eup %2246  ;;  %2272 = verf.f32 %v1355_v46  ;;  %v1374_v8 = vadd.f32 1.0, %v2245_v45  ;;  %v1338_v46 = vmul.f32 0.5, %v2868_v33 }
 0x7aa   :  { %v2249_v49 = vpop.eup %2248  ;;  %v1373_v2 = vadd.f32 1.0, %v2247_v47  ;;  %v1388_v21 = vmul.f32 %v1372_v57, %v1324_v0  ;;  %v1337_v47 = vmul.f32 0.5, %v2874_v41 }
 0x7ab   :  { %v2251_v50 = vpop.eup %2250  ;;  %v1375_v59 = vadd.f32 1.0, %v2249_v49  ;;  %v1390_v19 = vmul.f32 %v1374_v8, %v1326_v5 }
 0x7ac   :  { %v2253_v52 = vpop.eup %2252  ;;  %v1376_v56 = vadd.f32 1.0, %v2251_v50  ;;  %v1389_v17 = vmul.f32 %v1373_v2, %v1325_v1  ;;  %v1334_v1 = vmul.f32 0.5, %v2857_v11  ;;  %v1871_v11 = vld [vmem:[%s2916_s12] ss:$0 sm:$0xff]  ;;  %s2299_s12 = smov [#allocation2]  }
 0x7ad   :  { %v2255_v3 = vpop.eup %2254  ;;  %v1378_v4 = vadd.f32 1.0, %v2253_v52  ;;  %v1391_v22 = vmul.f32 %v1375_v59, %v1327_v14  ;;  %v1339_v52 = vmul.f32 0.5, %v2876_v42  ;;  %s1786_s14 = sshll.u32 %s2299_s12, 4  ;;  %s1787_s14 = int_to_ptr.vmem [resolvable:$true] %s1786_s14 }
 0x7ae   :  { %v2257_v7 = vpop.eup %2256  ;;  %v1377_v54 = vadd.f32 1.0, %v2255_v3  ;;  %v1392_v15 = vmul.f32 %v1376_v56, %v1328_v60  ;;  %s2274_s4 = scalar_lea.vmem %s1787_s14, 512  ;;  %p2279_p1 = scmp.lt.s32.totalorder %s1787_s14, %s1787_s14 }
 0x7af   :  { %v2259_v27 = vpop.eup %2258  ;;  %v1379_v10 = vadd.f32 1.0, %v2257_v7  ;;  %v1394_v12 = vmul.f32 %v1378_v4, %v1330_v9  ;;  %p2275_p0 = scmp.ne.s32.totalorder %s1787_s14, %s2274_s4  ;;  %p2280_p2 = scmp.lt.s32.totalorder %s2274_s4, %s2274_s4 }
 0x7b0   :  { %v2261_v16 = vpop.eup %2260  ;;  %v1393_v58 = vmul.f32 %v1377_v54, %v1329_v20  ;;  %v1404_v26 = vpack.c.bf16 %v1392_v15, %v1388_v21  ;;  %v1380_v37 = vadd.f32 1.0, %v2259_v27 }
 0x7b1   :  { %v2263_v61 = vpop.eup %2262  ;;  %v1395_v23 = vmul.f32 %v1379_v10, %v1331_v62  ;;  %v1406_v30 = vpack.c.bf16 %v1394_v12, %v1390_v19  ;;  %v1382_v45 = vadd.f32 1.0, %v2261_v16  ;;  %p2281_p3 = por %p2280_p2, %p2279_p1 }
 0x7b2   :  { %v2265_v18 = vpop.eup %2264  ;;  %v1405_v24 = vpack.c.bf16 %v1393_v58, %v1389_v17  ;;  %v1381_v63 = vadd.f32 1.0, %v2263_v61  ;;  %v1396_v32 = vmul.f32 %v1380_v37, %v1332_v34 }
 0x7b3   :  { %v2267_v25 = vpop.eup %2266  ;;  %v1407_v13 = vpack.c.bf16 %v1395_v23, %v1391_v22  ;;  %v1383_v40 = vadd.f32 1.0, %v2265_v18  ;;  %v1398_v59 = vmul.f32 %v1382_v45, %v1334_v1  ;;  %p2282_p4 = pnand %p2281_p3, %p2275_p0 }
 0x7b4   :  { %v2269_v29 = vpop.eup %2268  ;;  %v1384_v6 = vadd.f32 1.0, %v2267_v25  ;;  %1707 = vmatprep.mubr.bf16.mxu0 %v1405_v24  ;;  %v1397_v28 = vmul.f32 %v1381_v63, %v1333_v38 }
 0x7b5   :  { %v1386_v35 = vadd.f32 1.0, %v2269_v29  ;;  %1756 = vmatprep.mubr.bf16.mxu1 %v1407_v13  ;;  %1708 = vmatmul.mubr.bf16.vlgmr.msra.gmra.mxu0 %v1404_v26  ;;  %v2271_v36 = vpop.eup %2270  ;;  %v1399_v3 = vmul.f32 %v1383_v40, %v1335_v39 }
 0x7b6   :  { %1757 = vmatmul.mubr.bf16.vlgmr.msra.gmra.mxu1 %v1406_v30  ;;  %v2273_v44 = vpop.eup %2272  ;;  %v1385_v49 = vadd.f32 1.0, %v2271_v36  ;;  %v1400_v50 = vmul.f32 %v1384_v6, %v1336_v43 }
 0x7b7   :  { %v1387_v0 = vadd.f32 1.0, %v2273_v44  ;;  %v1402_v2 = vmul.f32 %v1386_v35, %v1338_v46 }
 0x7b8   :  { %v1401_v56 = vmul.f32 %v1385_v49, %v1337_v47  ;;  %v1408_v4 = vpack.c.bf16 %v1400_v50, %v1396_v32 }
 0x7b9   :  { %v1403_v57 = vmul.f32 %v1387_v0, %v1339_v52  ;;  %v1410_v41 = vpack.c.bf16 %v1402_v2, %v1398_v59 }
 0x7ba   :  { %v1409_v60 = vpack.c.bf16 %v1401_v56, %v1397_v28 }
 0x7bb   :  { %v1411_v33 = vpack.c.bf16 %v1403_v57, %v1399_v3 }
 0x7bc   :  { %1715 = vmatprep.mubr.bf16.mxu0 %v1409_v60 }
 0x7bd   :  { %1764 = vmatprep.mubr.bf16.mxu1 %v1411_v33  ;;  %1716 = vmatmul.mubr.bf16.gmra.mxu0 %v1408_v4 }
 0x7be   :  { %1765 = vmatmul.mubr.bf16.gmra.mxu1 %v1410_v41 }
 0x875   :  { %v1956_v31 = vpop.f32.mrf.mxu0 }
 0x876   :  { %v1984_v42 = vpop.f32.mrf.mxu1 }
 0x877   :  { %v1957_v7 = vpop.f32.mrf.mxu0 }
 0x878   :  { %v1958_v8 = vadd.f32 %v1957_v7, %v1956_v31  ;;  %v1985_v9 = vpop.f32.mrf.mxu1 }
 0x879   :  { %v1959_v20 = vpop.f32.mrf.mxu0  ;;  %v1986_v27 = vadd.f32 %v1985_v9, %v1984_v42 }
 0x87a   :  { %v1710_v54 = vadd.f32 %v1958_v8, %v1871_v11  ;;  %v1987_v14 = vpop.f32.mrf.mxu1 }
 0x87b   :  { %v1960_v15 = vpop.f32.mrf.mxu0 }
 0x87c   :  { %v1759_v62 = vadd.f32 %v1986_v27, %v1710_v54  ;;  %v1961_v10 = vadd.f32 %v1960_v15, %v1959_v20  ;;  %v1988_v16 = vpop.f32.mrf.mxu1 }
 0x87d   :  { %v1989_v12 = vadd.f32 %v1988_v16, %v1987_v14  ;;  %v1962_v58 = vpop.f32.mrf.mxu0 }
 0x87e   :  { %v1773_v5 = vadd.f32 %v1759_v62, %v2590_v48  ;;  %v1713_v17 = vadd.f32 %v1961_v10, %v1871_v11  ;;  %v1990_v61 = vpop.f32.mrf.mxu1 }
 0x87f   :  { %v1963_v22 = vpop.f32.mrf.mxu0 }
 0x880   :  { %1777 = vst [vmem:[#allocation2] sm:$0xff] %v1773_v5  ;;  %v1762_v21 = vadd.f32 %v1989_v12, %v1713_v17  ;;  %v1964_v23 = vadd.f32 %v1963_v22, %v1962_v58  ;;  %v1991_v18 = vpop.f32.mrf.mxu1 }
 0x881   :  { %v1965_v24 = vpop.f32.mrf.mxu0  ;;  %v1992_v26 = vadd.f32 %v1991_v18, %v1990_v61 }
 0x882   :  { %v1774_v19 = vadd.f32 %v1762_v21, %v2597_v53  ;;  %v1718_v25 = vadd.f32 %v1964_v23, %v1871_v11  ;;  %v1993_v13 = vpop.f32.mrf.mxu1 }
 0x883   :  { %v1966_v29 = vpop.f32.mrf.mxu0 }
 0x884   :  { %1778 = vst [vmem:[#allocation2 + $0x8] sm:$0xff] %v1774_v19  ;;  %v1767_v30 = vadd.f32 %v1992_v26, %v1718_v25  ;;  %v1967_v6 = vadd.f32 %v1966_v29, %v1965_v24  ;;  %v1994_v48 = vpop.f32.mrf.mxu1 }
 0x885   :  { %v1995_v35 = vadd.f32 %v1994_v48, %v1993_v13 }
 0x886   :  { %v1775_v34 = vadd.f32 %v1767_v30, %v2594_v51  ;;  %v1721_v63 = vadd.f32 %v1967_v6, %v1871_v11 }
 0x888   :  { %1779 = vst [vmem:[#allocation2 + $0x10] sm:$0xff] %v1775_v34  ;;  %v1770_v36 = vadd.f32 %v1995_v35, %v1721_v63 }
 0x88a   :  { %v1776_v37 = vadd.f32 %v1770_v36, %v2602_v55 }
 0x88c   :  { %1780 = vst [vmem:[#allocation2 + $0x18] sm:$0xff] %v1776_v37 }
 0x88d   :  { %2285 = shalt.err (!%p2282_p4)
}
 0x88e   :  { %s2300_s15 = smov 128   ;;  %s2301_s16 = smov 8  }
 0x88f   :  { %1792 = dma.vmem_to_hbm [thread:$0]  %s1787_s14, 512, %s2917_s13, [#allocation3], %s2300_s15, %s2300_s15, %s2301_s16  }
 0x890   :  { %2294 = dma.done.wait [#allocation3], 512  }
 0x891   :  { %2295 = vsyncadd [#allocation3], 4294966784 }
 0x892   :  { %1796 = vsyncpa [#allocation3], 1 }

</bundles_post_ra>
